<compile_context>
chip_gen: v5e
topology: v5e:2x2
jax: 0.10.0
libtpu: 0.0.40
codegen_flags: <defaults>
</compile_context>

<pallas_src>
import functools
import math

import jax
import jax.numpy as jnp
from jax import lax
from jax.experimental import pallas as pl
from jax.experimental.pallas import tpu as pltpu

# ----------------------------- config (toy sizes) -----------------------------
BATCH = 2
FRAMES = 4
CHANNELS = 3
IMG = 16
TUBELET = 2          # temporal patch size
PATCH = 8            # spatial patch size
HIDDEN = 32          # hidden_size of the synthetic VideoMAE backbone
HEADS = 4
HEAD_DIM = HIDDEN // HEADS
LAYERS = 2
MLP = 4 * HIDDEN
PROJ_DIM = 256       # nn.Linear(hidden_size, 256)
OUT_DIM = 3          # nn.Linear(256, 3)
OUT_PAD = 128        # lane-dense padded width of the final output slab
SEQ = (FRAMES // TUBELET) * (IMG // PATCH) * (IMG // PATCH)   # = 8
PATCH_DIM = CHANNELS * TUBELET * PATCH * PATCH                # = 384
LN_EPS = 1e-12       # VideoMAE layer_norm_eps
NEG_INF = -1e30      # additive mask value (scores stay f32 in-kernel)

# packed small-parameter row layout (width = HIDDEN)
_R_PATCH_B = 0
_ROWS_PER_LAYER = 6
_R_LN1_G, _R_LN1_B, _R_OB, _R_LN2_G, _R_LN2_B, _R_FC2_B = range(_ROWS_PER_LAYER)
SMALL_D_ROWS = 1 + _ROWS_PER_LAYER * LAYERS

_VMEM = pl.BlockSpec(memory_space=pltpu.MemorySpace.VMEM)


# ------------------------------- Pallas kernel --------------------------------
def _layer_norm(v, g, b):
    # E[x^2] - E[x]^2 form: the two cross-lane reductions are independent.
    mu = jnp.mean(v, axis=-1, keepdims=True)
    ms = jnp.mean(v * v, axis=-1, keepdims=True)
    var = jnp.maximum(ms - mu * mu, 0.0)
    return (v - mu) * lax.rsqrt(var + LN_EPS) * g + b


def _batch_id(idx, seq):
    # batch-id of a row/col index; shift when seq is a power of two.
    if seq & (seq - 1) == 0:
        return jnp.right_shift(idx, seq.bit_length() - 1)
    return idx // seq


def fused_vision_kernel(
    # activations
    patches_ref, pos_ref,
    # weights (bf16)
    patch_w_ref, wqkv_ref, ow_ref, fc1_w_ref, fc2_w_ref, proj_w_ref, out_w_ref,
    # packed tiny parameters (f32)
    small_d_ref, small_wide_ref,
    # outputs
    emb_ref, out_ref,
    *, num_heads, num_layers, batch, seq,
):
    bs = patches_ref.shape[0]            # B * S
    d = patch_w_ref.shape[1]             # HIDDEN
    mlp = fc1_w_ref.shape[-1]
    out_pad = out_w_ref.shape[-1]

    def dvec(row):                       # [1, D] slice of the packed buffer
        return small_d_ref[row:row + 1, :]

    # --- patch embedding (tubelet Conv3d as one matmul) + positional emb ---
    x = (jnp.dot(patches_ref[...], patch_w_ref[...],
                 preferred_element_type=jnp.float32)
         + dvec(_R_PATCH_B) + pos_ref[...])                      # [B*S, D] f32

    # block-diagonal additive attention bias, generated in-kernel (no
    # O((B*S)^2) DMA); built once, hoisted out of the layer loop.
    rows = lax.broadcasted_iota(jnp.int32, (1, bs, bs), 1)
    cols = lax.broadcasted_iota(jnp.int32, (1, bs, bs), 2)
    attn_bias = jnp.where(_batch_id(rows, seq) == _batch_id(cols, seq),
                          0.0, NEG_INF).astype(jnp.float32)      # [1, B*S, B*S]

    for l in range(num_layers):                                  # static unroll
        base = 1 + l * _ROWS_PER_LAYER

        # ---------------- self-attention (pre-LN) ----------------
        h1 = _layer_norm(x, dvec(base + _R_LN1_G), dvec(base + _R_LN1_B))
        h1b = jnp.broadcast_to(h1.astype(jnp.bfloat16)[None],
                               (3 * num_heads, bs, d))
        # head-major Q/K/V straight from the MXU (pre-split per-head weights;
        # no lane slicing / stacking of the qkv activation).
        qkv = jnp.einsum('bsd,bde->bse', h1b, wqkv_ref[l],
                         preferred_element_type=jnp.float32)
        qkv = qkv.astype(jnp.bfloat16)                           # [3H, B*S, hd]
        qh = qkv[:num_heads]
        kh = qkv[num_heads:2 * num_heads]
        vh = qkv[2 * num_heads:]
        # TODO(synk): HF VideoMAE has Q/V projection biases; with this layout
        # they'd be added as [H,1,hd] slices (Q bias also scaled by 1/sqrt(hd)).
        # They are zero in this synthetic init, so omitted from the kernel.

        # 1/sqrt(head_dim) is folded into the Q weights at init time.
        s = jnp.einsum('hsd,htd->hst', qh, kh,
                       preferred_element_type=jnp.float32) + attn_bias
        s = s - jnp.max(s, axis=-1, keepdims=True)
        p = jnp.exp(s)
        p = p * pl.reciprocal(jnp.sum(p, axis=-1, keepdims=True), approx=True)
        ctx = jnp.einsum('hst,htd->hsd', p.astype(jnp.bfloat16), vh,
                         preferred_element_type=jnp.float32)     # [H, B*S, hd]

        # merge heads WITHOUT concatenate: contract each head with its slice
        # of the output projection ([H, hd, D]) and sum over heads.
        attn = (jnp.einsum('hsd,hde->hse', ctx.astype(jnp.bfloat16), ow_ref[l],
                           preferred_element_type=jnp.float32).sum(axis=0)
                + dvec(base + _R_OB))
        x = x + attn

        # ------------------------- MLP ---------------------------
        h2 = _layer_norm(x, dvec(base + _R_LN2_G), dvec(base + _R_LN2_B))
        ff = (jnp.dot(h2.astype(jnp.bfloat16), fc1_w_ref[l],
                      preferred_element_type=jnp.float32)
              + small_wide_ref[l:l + 1, 0:mlp])
        # TODO(synk): VideoMAE uses exact erf GELU; tanh-approx GELU is used
        # here (backbone weights are synthetic, so no numerical match needed).
        ff = jax.nn.gelu(ff)
        x = x + (jnp.dot(ff.astype(jnp.bfloat16), fc2_w_ref[l],
                         preferred_element_type=jnp.float32)
                 + dvec(base + _R_FC2_B))

    # --- AdaptiveAvgPool1d(1) over the sequence as an MXU matmul; the 1/S
    # pooling matrix is built in-kernel from iota batch-id comparisons. ---
    pr = lax.broadcasted_iota(jnp.int32, (batch, bs), 0)
    pc = _batch_id(lax.broadcasted_iota(jnp.int32, (batch, bs), 1), seq)
    pool = jnp.where(pr == pc, 1.0 / seq, 0.0).astype(jnp.bfloat16)
    pooled = jnp.dot(pool, x.astype(jnp.bfloat16),
                     preferred_element_type=jnp.float32)         # [B, D]

    # --- proj head (embeddings) and lane-dense padded out head ---
    proj = (jnp.dot(pooled.astype(jnp.bfloat16), proj_w_ref[...],
                    preferred_element_type=jnp.float32)
            + small_wide_ref[num_layers + 1:num_layers + 2, :])  # [B, 256]
    emb_ref[...] = proj
    out_ref[...] = (jnp.dot(proj.astype(jnp.bfloat16), out_w_ref[...],
                            preferred_element_type=jnp.float32)
                    + small_wide_ref[num_layers:num_layers + 1, 0:out_pad])


# ------------------------------ Pallas wrapper ---------------------------------
def _fused_forward(patches, pos, params):
    bs = patches.shape[0]
    b = bs // SEQ
    kernel = functools.partial(fused_vision_kernel, num_heads=HEADS,
                               num_layers=LAYERS, batch=b, seq=SEQ)
    emb, out_pad = pl.pallas_call(
        kernel,
        out_shape=(jax.ShapeDtypeStruct((b, PROJ_DIM), jnp.float32),
                   jax.ShapeDtypeStruct((b, OUT_PAD), jnp.float32)),
        in_specs=[_VMEM] * 11,
        out_specs=(_VMEM, _VMEM),
    )(patches, pos,
      params["patch_w"], params["wqkv"], params["ow"],
      params["fc1_w"], params["fc2_w"], params["proj_w"], params["out_w"],
      params["small_d"], params["small_wide"])
    return emb, out_pad


# ------------------------------ glue (plain JAX) -------------------------------
def patchify(pixel_values):
    """(B, T, C, H, W) -> (B*S, C*TUBELET*PATCH*PATCH), matching Conv3d tubelet
    embedding (kernel = stride = (TUBELET, PATCH, PATCH)), seq order (t, h, w)."""
    b, t, c, h, w = pixel_values.shape
    x = jnp.transpose(pixel_values, (0, 2, 1, 3, 4))           # B, C, T, H, W
    x = x.reshape(b, c, t // TUBELET, TUBELET, h // PATCH, PATCH, w // PATCH, PATCH)
    x = jnp.transpose(x, (0, 2, 4, 6, 1, 3, 5, 7))             # B, t', h', w', C, kt, kh, kw
    x = x.reshape(b, SEQ, PATCH_DIM)
    return x.reshape(b * SEQ, PATCH_DIM)


def init_params(key):
    def normal(k, shape, scale=0.02):
        return (scale * jax.random.normal(k, shape)).astype(jnp.float32)

    keys = iter(jax.random.split(key, 10))
    bf16 = jnp.bfloat16

    # per-head Q/K/V weights, head-major: [LAYERS, 3, HEADS, HIDDEN, HEAD_DIM];
    # fold the 1/sqrt(head_dim) attention scale into the Q weights.
    wqkv = normal(next(keys), (LAYERS, 3, HEADS, HIDDEN, HEAD_DIM))
    wqkv = wqkv.at[:, 0].multiply(1.0 / math.sqrt(HEAD_DIM))
    wqkv = wqkv.reshape(LAYERS, 3 * HEADS, HIDDEN, HEAD_DIM)

    # 3-wide out head stored as a zero-padded lane-dense [256, 128] slab;
    # padded columns are zero so slicing [:, :OUT_DIM] recovers the result.
    out_w = jnp.zeros((PROJ_DIM, OUT_PAD), jnp.float32)
    out_w = out_w.at[:, :OUT_DIM].set(normal(next(keys), (PROJ_DIM, OUT_DIM)))

    # packed tiny width-HIDDEN vectors:
    #   row 0: patch_b; per layer l: [ln1_g, ln1_b, attn_out_b, ln2_g, ln2_b, fc2_b]
    small_d = jnp.zeros((SMALL_D_ROWS, HIDDEN), jnp.float32)
    for l in range(LAYERS):
        base = 1 + l * _ROWS_PER_LAYER
        small_d = small_d.at[base + _R_LN1_G].set(1.0)
        small_d = small_d.at[base + _R_LN2_G].set(1.0)

    # packed wide biases (width 256): rows [fc1_b layer 0..L-1, out_b, proj_b]
    small_wide = jnp.zeros((LAYERS + 2, PROJ_DIM), jnp.float32)

    return {
        "pos_emb": normal(next(keys), (SEQ, HIDDEN)),                      # f32
        "patch_w": normal(next(keys), (PATCH_DIM, HIDDEN)).astype(bf16),
        "wqkv": wqkv.astype(bf16),
        "ow": normal(next(keys), (LAYERS, HEADS, HEAD_DIM, HIDDEN)).astype(bf16),
        "fc1_w": normal(next(keys), (LAYERS, HIDDEN, MLP)).astype(bf16),
        "fc2_w": normal(next(keys), (LAYERS, MLP, HIDDEN)).astype(bf16),
        "proj_w": normal(next(keys), (HIDDEN, PROJ_DIM)).astype(bf16),
        "out_w": out_w.astype(bf16),
        "small_d": small_d,
        "small_wide": small_wide,
    }


@functools.partial(jax.jit, static_argnames=("return_embeddings",))
def vision_model_forward(pixel_values, params, return_embeddings=False):
    b = pixel_values.shape[0]
    patches = patchify(pixel_values).astype(jnp.bfloat16)        # [B*S, PATCH_DIM]
    pos = jnp.tile(params["pos_emb"], (b, 1))                    # [B*S, D] f32
    emb, out_pad = _fused_forward(patches, pos, params)
    if return_embeddings:
        return emb                                               # [B, 256]
    return out_pad[:, :OUT_DIM]                                  # [B, 3]


# TODO(synk): VideoMAEModel.from_pretrained checkpoint load has no Pallas
# equivalent; backbone weights are synthetic (deterministic PRNGKey init).

if __name__ == "__main__":
    key = jax.random.PRNGKey(0)
    k_param, k_in = jax.random.split(key)
    params = init_params(k_param)
    pixel_values = jax.random.normal(
        k_in, (BATCH, FRAMES, CHANNELS, IMG, IMG), dtype=jnp.float32
    )

    out = vision_model_forward(pixel_values, params)
    out = jax.block_until_ready(out)
    assert out.shape == (BATCH, OUT_DIM), out.shape
    assert bool(jnp.all(jnp.isfinite(out)))

    emb = vision_model_forward(pixel_values, params, return_embeddings=True)
    emb = jax.block_until_ready(emb)
    assert emb.shape == (BATCH, PROJ_DIM), emb.shape
    assert bool(jnp.all(jnp.isfinite(emb)))

    print("KERNEL_OK")
</pallas_src>

<mosaic_0001>
module attributes {stable_mosaic.version = 11 : i64} {
  func.func @fused_vision_kernel(%arg0: memref<16x384xbf16, #tpu.memory_space<vmem>>, %arg1: memref<16x32xf32, #tpu.memory_space<vmem>>, %arg2: memref<384x32xbf16, #tpu.memory_space<vmem>>, %arg3: memref<2x12x32x8xbf16, #tpu.memory_space<vmem>>, %arg4: memref<2x4x8x32xbf16, #tpu.memory_space<vmem>>, %arg5: memref<2x32x128xbf16, #tpu.memory_space<vmem>>, %arg6: memref<2x128x32xbf16, #tpu.memory_space<vmem>>, %arg7: memref<32x256xbf16, #tpu.memory_space<vmem>>, %arg8: memref<256x128xbf16, #tpu.memory_space<vmem>>, %arg9: memref<13x32xf32, #tpu.memory_space<vmem>>, %arg10: memref<4x256xf32, #tpu.memory_space<vmem>>, %arg11: memref<2x256xf32, #tpu.memory_space<vmem>>, %arg12: memref<2x128xf32, #tpu.memory_space<vmem>>) attributes {dimension_semantics = [], scalar_prefetch = 0 : i64, scratch_operands = 0 : i64, tpu.core_type = #tpu.core_type<tc>} {
    %c0 = arith.constant 0 : index
    %c0_0 = arith.constant 0 : index
    %0 = vector.load %arg0[%c0, %c0_0] : memref<16x384xbf16, #tpu.memory_space<vmem>>, vector<16x384xbf16>
    %c0_1 = arith.constant 0 : index
    %c0_2 = arith.constant 0 : index
    %1 = vector.load %arg2[%c0_1, %c0_2] : memref<384x32xbf16, #tpu.memory_space<vmem>>, vector<384x32xbf16>
    %cst = arith.constant dense<0.000000e+00> : vector<16x32xf32>
    %2 = tpu.matmul %0, %1, %cst {dimension_numbers = #tpu.dot_dimension_numbers<[1], [0], [0], [1], [0, 0, 1, 1], [], []>} : vector<16x384xbf16>, vector<384x32xbf16>, vector<16x32xf32> -> vector<16x32xf32>
    %c0_3 = arith.constant 0 : index
    %c0_4 = arith.constant 0 : index
    %3 = vector.load %arg9[%c0_3, %c0_4] : memref<13x32xf32, #tpu.memory_space<vmem>>, vector<1x32xf32>
    %4 = vector.broadcast %3 : vector<1x32xf32> to vector<16x32xf32>
    %5 = arith.addf %2, %4 : vector<16x32xf32>
    %c0_5 = arith.constant 0 : index
    %c0_6 = arith.constant 0 : index
    %6 = vector.load %arg1[%c0_5, %c0_6] : memref<16x32xf32, #tpu.memory_space<vmem>>, vector<16x32xf32>
    %7 = arith.addf %5, %6 : vector<16x32xf32>
    %8 = tpu.iota {dimensions = array<i32: 1>} : vector<1x16x16xi32>
    %9 = tpu.iota {dimensions = array<i32: 2>} : vector<1x16x16xi32>
    %c3_i32 = arith.constant 3 : i32
    %10 = vector.broadcast %c3_i32 : i32 to vector<1x16x16xi32>
    %11 = arith.shrsi %8, %10 : vector<1x16x16xi32>
    %c3_i32_7 = arith.constant 3 : i32
    %12 = vector.broadcast %c3_i32_7 : i32 to vector<1x16x16xi32>
    %13 = arith.shrsi %9, %12 : vector<1x16x16xi32>
    %14 = arith.cmpi eq, %11, %13 : vector<1x16x16xi32>
    %cst_8 = arith.constant 0.000000e+00 : f32
    %cst_9 = arith.constant -1.000000e+30 : f32
    %15 = vector.broadcast %cst_8 : f32 to vector<1x16x16xf32>
    %16 = vector.broadcast %cst_9 : f32 to vector<1x16x16xf32>
    %17 = arith.select %14, %15, %16 : vector<1x16x16xi1>, vector<1x16x16xf32>
    %c1 = arith.constant 1 : index
    %c0_10 = arith.constant 0 : index
    %18 = vector.load %arg9[%c1, %c0_10] : memref<13x32xf32, #tpu.memory_space<vmem>>, vector<1x32xf32>
    %c2 = arith.constant 2 : index
    %c0_11 = arith.constant 0 : index
    %19 = vector.load %arg9[%c2, %c0_11] : memref<13x32xf32, #tpu.memory_space<vmem>>, vector<1x32xf32>
    %cst_12 = arith.constant dense<0.000000e+00> : vector<16xf32>
    %20 = vector.multi_reduction <add>, %7, %cst_12 [1] : vector<16x32xf32> to vector<16xf32>
    %21 = vector.shape_cast %20 : vector<16xf32> to vector<16x1xf32>
    %cst_13 = arith.constant 3.200000e+01 : f32
    %22 = vector.broadcast %cst_13 : f32 to vector<16x1xf32>
    %23 = arith.divf %21, %22 : vector<16x1xf32>
    %24 = arith.mulf %7, %7 : vector<16x32xf32>
    %cst_14 = arith.constant dense<0.000000e+00> : vector<16xf32>
    %25 = vector.multi_reduction <add>, %24, %cst_14 [1] : vector<16x32xf32> to vector<16xf32>
    %26 = vector.shape_cast %25 : vector<16xf32> to vector<16x1xf32>
    %cst_15 = arith.constant 3.200000e+01 : f32
    %27 = vector.broadcast %cst_15 : f32 to vector<16x1xf32>
    %28 = arith.divf %26, %27 : vector<16x1xf32>
    %29 = arith.mulf %23, %23 : vector<16x1xf32>
    %30 = arith.subf %28, %29 : vector<16x1xf32>
    %cst_16 = arith.constant 0.000000e+00 : f32
    %31 = vector.broadcast %cst_16 : f32 to vector<16x1xf32>
    %32 = arith.maximumf %30, %31 : vector<16x1xf32>
    %33 = vector.broadcast %23 : vector<16x1xf32> to vector<16x32xf32>
    %34 = arith.subf %7, %33 : vector<16x32xf32>
    %cst_17 = arith.constant 9.99999996E-13 : f32
    %35 = vector.broadcast %cst_17 : f32 to vector<16x1xf32>
    %36 = arith.addf %32, %35 : vector<16x1xf32>
    %37 = math.rsqrt %36 : vector<16x1xf32>
    %38 = vector.broadcast %37 : vector<16x1xf32> to vector<16x32xf32>
    %39 = arith.mulf %34, %38 : vector<16x32xf32>
    %40 = vector.broadcast %18 : vector<1x32xf32> to vector<16x32xf32>
    %41 = arith.mulf %39, %40 : vector<16x32xf32>
    %42 = vector.broadcast %19 : vector<1x32xf32> to vector<16x32xf32>
    %43 = arith.addf %41, %42 : vector<16x32xf32>
    %44 = arith.truncf %43 : vector<16x32xf32> to vector<16x32xbf16>
    %45 = vector.shape_cast %44 : vector<16x32xbf16> to vector<1x16x32xbf16>
    %46 = vector.shape_cast %45 : vector<1x16x32xbf16> to vector<1x16x32xbf16>
    %47 = vector.broadcast %46 : vector<1x16x32xbf16> to vector<12x16x32xbf16>
    %c0_18 = arith.constant 0 : index
    %c0_19 = arith.constant 0 : index
    %c0_20 = arith.constant 0 : index
    %c0_21 = arith.constant 0 : index
    %48 = vector.load %arg3[%c0_18, %c0_19, %c0_20, %c0_21] : memref<2x12x32x8xbf16, #tpu.memory_space<vmem>>, vector<1x12x32x8xbf16>
    %49 = vector.shape_cast %48 : vector<1x12x32x8xbf16> to vector<12x32x8xbf16>
    "tpu.trace_start"() <{level = 10 : i32, message = "bsd,bde->bse"}> : () -> ()
    %cst_22 = arith.constant dense<0.000000e+00> : vector<12x16x8xf32>
    %50 = tpu.matmul %47, %49, %cst_22 {dimension_numbers = #tpu.dot_dimension_numbers<[2], [1], [1], [2], [0, 0, 0, 1, 1, 2], [0], [0]>} : vector<12x16x32xbf16>, vector<12x32x8xbf16>, vector<12x16x8xf32> -> vector<12x16x8xf32>
    "tpu.trace_stop"() : () -> ()
    %51 = arith.truncf %50 : vector<12x16x8xf32> to vector<12x16x8xbf16>
    %52 = vector.extract_strided_slice %51 {offsets = [0, 0, 0], sizes = [4, 16, 8], strides = [1, 1, 1]} : vector<12x16x8xbf16> to vector<4x16x8xbf16>
    %53 = vector.extract_strided_slice %51 {offsets = [4, 0, 0], sizes = [4, 16, 8], strides = [1, 1, 1]} : vector<12x16x8xbf16> to vector<4x16x8xbf16>
    %54 = vector.extract_strided_slice %51 {offsets = [8, 0, 0], sizes = [4, 16, 8], strides = [1, 1, 1]} : vector<12x16x8xbf16> to vector<4x16x8xbf16>
    "tpu.trace_start"() <{level = 10 : i32, message = "hsd,htd->hst"}> : () -> ()
    %cst_23 = arith.constant dense<0.000000e+00> : vector<4x16x16xf32>
    %55 = tpu.matmul %52, %53, %cst_23 {dimension_numbers = #tpu.dot_dimension_numbers<[2], [2], [1], [1], [0, 0, 0, 1, 1, 1], [0], [0]>} : vector<4x16x8xbf16>, vector<4x16x8xbf16>, vector<4x16x16xf32> -> vector<4x16x16xf32>
    "tpu.trace_stop"() : () -> ()
    %56 = vector.broadcast %17 : vector<1x16x16xf32> to vector<4x16x16xf32>
    %57 = arith.addf %55, %56 : vector<4x16x16xf32>
    %cst_24 = arith.constant dense<0xFF800000> : vector<4x16xf32>
    %58 = vector.multi_reduction <maximumf>, %57, %cst_24 [2] : vector<4x16x16xf32> to vector<4x16xf32>
    %59 = vector.shape_cast %58 : vector<4x16xf32> to vector<4x16x1xf32>
    %60 = vector.broadcast %59 : vector<4x16x1xf32> to vector<4x16x16xf32>
    %61 = arith.subf %57, %60 : vector<4x16x16xf32>
    %62 = math.exp %61 : vector<4x16x16xf32>
    %cst_25 = arith.constant dense<0.000000e+00> : vector<4x16xf32>
    %63 = vector.multi_reduction <add>, %62, %cst_25 [2] : vector<4x16x16xf32> to vector<4x16xf32>
    %64 = vector.shape_cast %63 : vector<4x16xf32> to vector<4x16x1xf32>
    %65 = tpu.reciprocal %64 {approx = true} : vector<4x16x1xf32> -> vector<4x16x1xf32>
    %66 = vector.broadcast %65 : vector<4x16x1xf32> to vector<4x16x16xf32>
    %67 = arith.mulf %62, %66 : vector<4x16x16xf32>
    %68 = arith.truncf %67 : vector<4x16x16xf32> to vector<4x16x16xbf16>
    "tpu.trace_start"() <{level = 10 : i32, message = "hst,htd->hsd"}> : () -> ()
    %cst_26 = arith.constant dense<0.000000e+00> : vector<4x16x8xf32>
    %69 = tpu.matmul %68, %54, %cst_26 {dimension_numbers = #tpu.dot_dimension_numbers<[2], [1], [1], [2], [0, 0, 0, 1, 1, 2], [0], [0]>} : vector<4x16x16xbf16>, vector<4x16x8xbf16>, vector<4x16x8xf32> -> vector<4x16x8xf32>
    "tpu.trace_stop"() : () -> ()
    %70 = arith.truncf %69 : vector<4x16x8xf32> to vector<4x16x8xbf16>
    %c0_27 = arith.constant 0 : index
    %c0_28 = arith.constant 0 : index
    %c0_29 = arith.constant 0 : index
    %c0_30 = arith.constant 0 : index
    %71 = vector.load %arg4[%c0_27, %c0_28, %c0_29, %c0_30] : memref<2x4x8x32xbf16, #tpu.memory_space<vmem>>, vector<1x4x8x32xbf16>
    %72 = vector.shape_cast %71 : vector<1x4x8x32xbf16> to vector<4x8x32xbf16>
    "tpu.trace_start"() <{level = 10 : i32, message = "hsd,hde->hse"}> : () -> ()
    %cst_31 = arith.constant dense<0.000000e+00> : vector<4x16x32xf32>
    %73 = tpu.matmul %70, %72, %cst_31 {dimension_numbers = #tpu.dot_dimension_numbers<[2], [1], [1], [2], [0, 0, 0, 1, 1, 2], [0], [0]>} : vector<4x16x8xbf16>, vector<4x8x32xbf16>, vector<4x16x32xf32> -> vector<4x16x32xf32>
    "tpu.trace_stop"() : () -> ()
    %cst_32 = arith.constant dense<0.000000e+00> : vector<16x32xf32>
    %74 = vector.multi_reduction <add>, %73, %cst_32 [0] : vector<4x16x32xf32> to vector<16x32xf32>
    %c3 = arith.constant 3 : index
    %c0_33 = arith.constant 0 : index
    %75 = vector.load %arg9[%c3, %c0_33] : memref<13x32xf32, #tpu.memory_space<vmem>>, vector<1x32xf32>
    %76 = vector.broadcast %75 : vector<1x32xf32> to vector<16x32xf32>
    %77 = arith.addf %74, %76 : vector<16x32xf32>
    %78 = arith.addf %7, %77 : vector<16x32xf32>
    %c4 = arith.constant 4 : index
    %c0_34 = arith.constant 0 : index
    %79 = vector.load %arg9[%c4, %c0_34] : memref<13x32xf32, #tpu.memory_space<vmem>>, vector<1x32xf32>
    %c5 = arith.constant 5 : index
    %c0_35 = arith.constant 0 : index
    %80 = vector.load %arg9[%c5, %c0_35] : memref<13x32xf32, #tpu.memory_space<vmem>>, vector<1x32xf32>
    %cst_36 = arith.constant dense<0.000000e+00> : vector<16xf32>
    %81 = vector.multi_reduction <add>, %78, %cst_36 [1] : vector<16x32xf32> to vector<16xf32>
    %82 = vector.shape_cast %81 : vector<16xf32> to vector<16x1xf32>
    %cst_37 = arith.constant 3.200000e+01 : f32
    %83 = vector.broadcast %cst_37 : f32 to vector<16x1xf32>
    %84 = arith.divf %82, %83 : vector<16x1xf32>
    %85 = arith.mulf %78, %78 : vector<16x32xf32>
    %cst_38 = arith.constant dense<0.000000e+00> : vector<16xf32>
    %86 = vector.multi_reduction <add>, %85, %cst_38 [1] : vector<16x32xf32> to vector<16xf32>
    %87 = vector.shape_cast %86 : vector<16xf32> to vector<16x1xf32>
    %cst_39 = arith.constant 3.200000e+01 : f32
    %88 = vector.broadcast %cst_39 : f32 to vector<16x1xf32>
    %89 = arith.divf %87, %88 : vector<16x1xf32>
    %90 = arith.mulf %84, %84 : vector<16x1xf32>
    %91 = arith.subf %89, %90 : vector<16x1xf32>
    %cst_40 = arith.constant 0.000000e+00 : f32
    %92 = vector.broadcast %cst_40 : f32 to vector<16x1xf32>
    %93 = arith.maximumf %91, %92 : vector<16x1xf32>
    %94 = vector.broadcast %84 : vector<16x1xf32> to vector<16x32xf32>
    %95 = arith.subf %78, %94 : vector<16x32xf32>
    %cst_41 = arith.constant 9.99999996E-13 : f32
    %96 = vector.broadcast %cst_41 : f32 to vector<16x1xf32>
    %97 = arith.addf %93, %96 : vector<16x1xf32>
    %98 = math.rsqrt %97 : vector<16x1xf32>
    %99 = vector.broadcast %98 : vector<16x1xf32> to vector<16x32xf32>
    %100 = arith.mulf %95, %99 : vector<16x32xf32>
    %101 = vector.broadcast %79 : vector<1x32xf32> to vector<16x32xf32>
    %102 = arith.mulf %100, %101 : vector<16x32xf32>
    %103 = vector.broadcast %80 : vector<1x32xf32> to vector<16x32xf32>
    %104 = arith.addf %102, %103 : vector<16x32xf32>
    %105 = arith.truncf %104 : vector<16x32xf32> to vector<16x32xbf16>
    %c0_42 = arith.constant 0 : index
    %c0_43 = arith.constant 0 : index
    %c0_44 = arith.constant 0 : index
    %106 = vector.load %arg5[%c0_42, %c0_43, %c0_44] : memref<2x32x128xbf16, #tpu.memory_space<vmem>>, vector<1x32x128xbf16>
    %107 = vector.shape_cast %106 : vector<1x32x128xbf16> to vector<32x128xbf16>
    %cst_45 = arith.constant dense<0.000000e+00> : vector<16x128xf32>
    %108 = tpu.matmul %105, %107, %cst_45 {dimension_numbers = #tpu.dot_dimension_numbers<[1], [0], [0], [1], [0, 0, 1, 1], [], []>} : vector<16x32xbf16>, vector<32x128xbf16>, vector<16x128xf32> -> vector<16x128xf32>
    %c0_46 = arith.constant 0 : index
    %c0_47 = arith.constant 0 : index
    %109 = vector.load %arg10[%c0_46, %c0_47] : memref<4x256xf32, #tpu.memory_space<vmem>>, vector<1x128xf32>
    %110 = vector.broadcast %109 : vector<1x128xf32> to vector<16x128xf32>
    %111 = arith.addf %108, %110 : vector<16x128xf32>
    %112 = arith.mulf %111, %111 : vector<16x128xf32>
    %113 = arith.mulf %111, %112 : vector<16x128xf32>
    %cst_48 = arith.constant 4.471500e-02 : f32
    %114 = vector.broadcast %cst_48 : f32 to vector<16x128xf32>
    %115 = arith.mulf %114, %113 : vector<16x128xf32>
    %116 = arith.addf %111, %115 : vector<16x128xf32>
    %cst_49 = arith.constant 0.797884583 : f32
    %117 = vector.broadcast %cst_49 : f32 to vector<16x128xf32>
    %118 = arith.mulf %117, %116 : vector<16x128xf32>
    %119 = math.tanh %118 : vector<16x128xf32>
    %cst_50 = arith.constant 1.000000e+00 : f32
    %120 = vector.broadcast %cst_50 : f32 to vector<16x128xf32>
    %121 = arith.addf %120, %119 : vector<16x128xf32>
    %cst_51 = arith.constant 5.000000e-01 : f32
    %122 = vector.broadcast %cst_51 : f32 to vector<16x128xf32>
    %123 = arith.mulf %122, %121 : vector<16x128xf32>
    %124 = arith.mulf %111, %123 : vector<16x128xf32>
    %125 = arith.truncf %124 : vector<16x128xf32> to vector<16x128xbf16>
    %c0_52 = arith.constant 0 : index
    %c0_53 = arith.constant 0 : index
    %c0_54 = arith.constant 0 : index
    %126 = vector.load %arg6[%c0_52, %c0_53, %c0_54] : memref<2x128x32xbf16, #tpu.memory_space<vmem>>, vector<1x128x32xbf16>
    %127 = vector.shape_cast %126 : vector<1x128x32xbf16> to vector<128x32xbf16>
    %cst_55 = arith.constant dense<0.000000e+00> : vector<16x32xf32>
    %128 = tpu.matmul %125, %127, %cst_55 {dimension_numbers = #tpu.dot_dimension_numbers<[1], [0], [0], [1], [0, 0, 1, 1], [], []>} : vector<16x128xbf16>, vector<128x32xbf16>, vector<16x32xf32> -> vector<16x32xf32>
    %c6 = arith.constant 6 : index
    %c0_56 = arith.constant 0 : index
    %129 = vector.load %arg9[%c6, %c0_56] : memref<13x32xf32, #tpu.memory_space<vmem>>, vector<1x32xf32>
    %130 = vector.broadcast %129 : vector<1x32xf32> to vector<16x32xf32>
    %131 = arith.addf %128, %130 : vector<16x32xf32>
    %132 = arith.addf %78, %131 : vector<16x32xf32>
    %c7 = arith.constant 7 : index
    %c0_57 = arith.constant 0 : index
    %133 = vector.load %arg9[%c7, %c0_57] : memref<13x32xf32, #tpu.memory_space<vmem>>, vector<1x32xf32>
    %c8 = arith.constant 8 : index
    %c0_58 = arith.constant 0 : index
    %134 = vector.load %arg9[%c8, %c0_58] : memref<13x32xf32, #tpu.memory_space<vmem>>, vector<1x32xf32>
    %cst_59 = arith.constant dense<0.000000e+00> : vector<16xf32>
    %135 = vector.multi_reduction <add>, %132, %cst_59 [1] : vector<16x32xf32> to vector<16xf32>
    %136 = vector.shape_cast %135 : vector<16xf32> to vector<16x1xf32>
    %cst_60 = arith.constant 3.200000e+01 : f32
    %137 = vector.broadcast %cst_60 : f32 to vector<16x1xf32>
    %138 = arith.divf %136, %137 : vector<16x1xf32>
    %139 = arith.mulf %132, %132 : vector<16x32xf32>
    %cst_61 = arith.constant dense<0.000000e+00> : vector<16xf32>
    %140 = vector.multi_reduction <add>, %139, %cst_61 [1] : vector<16x32xf32> to vector<16xf32>
    %141 = vector.shape_cast %140 : vector<16xf32> to vector<16x1xf32>
    %cst_62 = arith.constant 3.200000e+01 : f32
    %142 = vector.broadcast %cst_62 : f32 to vector<16x1xf32>
    %143 = arith.divf %141, %142 : vector<16x1xf32>
    %144 = arith.mulf %138, %138 : vector<16x1xf32>
    %145 = arith.subf %143, %144 : vector<16x1xf32>
    %cst_63 = arith.constant 0.000000e+00 : f32
    %146 = vector.broadcast %cst_63 : f32 to vector<16x1xf32>
    %147 = arith.maximumf %145, %146 : vector<16x1xf32>
    %148 = vector.broadcast %138 : vector<16x1xf32> to vector<16x32xf32>
    %149 = arith.subf %132, %148 : vector<16x32xf32>
    %cst_64 = arith.constant 9.99999996E-13 : f32
    %150 = vector.broadcast %cst_64 : f32 to vector<16x1xf32>
    %151 = arith.addf %147, %150 : vector<16x1xf32>
    %152 = math.rsqrt %151 : vector<16x1xf32>
    %153 = vector.broadcast %152 : vector<16x1xf32> to vector<16x32xf32>
    %154 = arith.mulf %149, %153 : vector<16x32xf32>
    %155 = vector.broadcast %133 : vector<1x32xf32> to vector<16x32xf32>
    %156 = arith.mulf %154, %155 : vector<16x32xf32>
    %157 = vector.broadcast %134 : vector<1x32xf32> to vector<16x32xf32>
    %158 = arith.addf %156, %157 : vector<16x32xf32>
    %159 = arith.truncf %158 : vector<16x32xf32> to vector<16x32xbf16>
    %160 = vector.shape_cast %159 : vector<16x32xbf16> to vector<1x16x32xbf16>
    %161 = vector.shape_cast %160 : vector<1x16x32xbf16> to vector<1x16x32xbf16>
    %162 = vector.broadcast %161 : vector<1x16x32xbf16> to vector<12x16x32xbf16>
    %c1_65 = arith.constant 1 : index
    %c0_66 = arith.constant 0 : index
    %c0_67 = arith.constant 0 : index
    %c0_68 = arith.constant 0 : index
    %163 = vector.load %arg3[%c1_65, %c0_66, %c0_67, %c0_68] : memref<2x12x32x8xbf16, #tpu.memory_space<vmem>>, vector<1x12x32x8xbf16>
    %164 = vector.shape_cast %163 : vector<1x12x32x8xbf16> to vector<12x32x8xbf16>
    "tpu.trace_start"() <{level = 10 : i32, message = "bsd,bde->bse"}> : () -> ()
    %cst_69 = arith.constant dense<0.000000e+00> : vector<12x16x8xf32>
    %165 = tpu.matmul %162, %164, %cst_69 {dimension_numbers = #tpu.dot_dimension_numbers<[2], [1], [1], [2], [0, 0, 0, 1, 1, 2], [0], [0]>} : vector<12x16x32xbf16>, vector<12x32x8xbf16>, vector<12x16x8xf32> -> vector<12x16x8xf32>
    "tpu.trace_stop"() : () -> ()
    %166 = arith.truncf %165 : vector<12x16x8xf32> to vector<12x16x8xbf16>
    %167 = vector.extract_strided_slice %166 {offsets = [0, 0, 0], sizes = [4, 16, 8], strides = [1, 1, 1]} : vector<12x16x8xbf16> to vector<4x16x8xbf16>
    %168 = vector.extract_strided_slice %166 {offsets = [4, 0, 0], sizes = [4, 16, 8], strides = [1, 1, 1]} : vector<12x16x8xbf16> to vector<4x16x8xbf16>
    %169 = vector.extract_strided_slice %166 {offsets = [8, 0, 0], sizes = [4, 16, 8], strides = [1, 1, 1]} : vector<12x16x8xbf16> to vector<4x16x8xbf16>
    "tpu.trace_start"() <{level = 10 : i32, message = "hsd,htd->hst"}> : () -> ()
    %cst_70 = arith.constant dense<0.000000e+00> : vector<4x16x16xf32>
    %170 = tpu.matmul %167, %168, %cst_70 {dimension_numbers = #tpu.dot_dimension_numbers<[2], [2], [1], [1], [0, 0, 0, 1, 1, 1], [0], [0]>} : vector<4x16x8xbf16>, vector<4x16x8xbf16>, vector<4x16x16xf32> -> vector<4x16x16xf32>
    "tpu.trace_stop"() : () -> ()
    %171 = vector.broadcast %17 : vector<1x16x16xf32> to vector<4x16x16xf32>
    %172 = arith.addf %170, %171 : vector<4x16x16xf32>
    %cst_71 = arith.constant dense<0xFF800000> : vector<4x16xf32>
    %173 = vector.multi_reduction <maximumf>, %172, %cst_71 [2] : vector<4x16x16xf32> to vector<4x16xf32>
    %174 = vector.shape_cast %173 : vector<4x16xf32> to vector<4x16x1xf32>
    %175 = vector.broadcast %174 : vector<4x16x1xf32> to vector<4x16x16xf32>
    %176 = arith.subf %172, %175 : vector<4x16x16xf32>
    %177 = math.exp %176 : vector<4x16x16xf32>
    %cst_72 = arith.constant dense<0.000000e+00> : vector<4x16xf32>
    %178 = vector.multi_reduction <add>, %177, %cst_72 [2] : vector<4x16x16xf32> to vector<4x16xf32>
    %179 = vector.shape_cast %178 : vector<4x16xf32> to vector<4x16x1xf32>
    %180 = tpu.reciprocal %179 {approx = true} : vector<4x16x1xf32> -> vector<4x16x1xf32>
    %181 = vector.broadcast %180 : vector<4x16x1xf32> to vector<4x16x16xf32>
    %182 = arith.mulf %177, %181 : vector<4x16x16xf32>
    %183 = arith.truncf %182 : vector<4x16x16xf32> to vector<4x16x16xbf16>
    "tpu.trace_start"() <{level = 10 : i32, message = "hst,htd->hsd"}> : () -> ()
    %cst_73 = arith.constant dense<0.000000e+00> : vector<4x16x8xf32>
    %184 = tpu.matmul %183, %169, %cst_73 {dimension_numbers = #tpu.dot_dimension_numbers<[2], [1], [1], [2], [0, 0, 0, 1, 1, 2], [0], [0]>} : vector<4x16x16xbf16>, vector<4x16x8xbf16>, vector<4x16x8xf32> -> vector<4x16x8xf32>
    "tpu.trace_stop"() : () -> ()
    %185 = arith.truncf %184 : vector<4x16x8xf32> to vector<4x16x8xbf16>
    %c1_74 = arith.constant 1 : index
    %c0_75 = arith.constant 0 : index
    %c0_76 = arith.constant 0 : index
    %c0_77 = arith.constant 0 : index
    %186 = vector.load %arg4[%c1_74, %c0_75, %c0_76, %c0_77] : memref<2x4x8x32xbf16, #tpu.memory_space<vmem>>, vector<1x4x8x32xbf16>
    %187 = vector.shape_cast %186 : vector<1x4x8x32xbf16> to vector<4x8x32xbf16>
    "tpu.trace_start"() <{level = 10 : i32, message = "hsd,hde->hse"}> : () -> ()
    %cst_78 = arith.constant dense<0.000000e+00> : vector<4x16x32xf32>
    %188 = tpu.matmul %185, %187, %cst_78 {dimension_numbers = #tpu.dot_dimension_numbers<[2], [1], [1], [2], [0, 0, 0, 1, 1, 2], [0], [0]>} : vector<4x16x8xbf16>, vector<4x8x32xbf16>, vector<4x16x32xf32> -> vector<4x16x32xf32>
    "tpu.trace_stop"() : () -> ()
    %cst_79 = arith.constant dense<0.000000e+00> : vector<16x32xf32>
    %189 = vector.multi_reduction <add>, %188, %cst_79 [0] : vector<4x16x32xf32> to vector<16x32xf32>
    %c9 = arith.constant 9 : index
    %c0_80 = arith.constant 0 : index
    %190 = vector.load %arg9[%c9, %c0_80] : memref<13x32xf32, #tpu.memory_space<vmem>>, vector<1x32xf32>
    %191 = vector.broadcast %190 : vector<1x32xf32> to vector<16x32xf32>
    %192 = arith.addf %189, %191 : vector<16x32xf32>
    %193 = arith.addf %132, %192 : vector<16x32xf32>
    %c10 = arith.constant 10 : index
    %c0_81 = arith.constant 0 : index
    %194 = vector.load %arg9[%c10, %c0_81] : memref<13x32xf32, #tpu.memory_space<vmem>>, vector<1x32xf32>
    %c11 = arith.constant 11 : index
    %c0_82 = arith.constant 0 : index
    %195 = vector.load %arg9[%c11, %c0_82] : memref<13x32xf32, #tpu.memory_space<vmem>>, vector<1x32xf32>
    %cst_83 = arith.constant dense<0.000000e+00> : vector<16xf32>
    %196 = vector.multi_reduction <add>, %193, %cst_83 [1] : vector<16x32xf32> to vector<16xf32>
    %197 = vector.shape_cast %196 : vector<16xf32> to vector<16x1xf32>
    %cst_84 = arith.constant 3.200000e+01 : f32
    %198 = vector.broadcast %cst_84 : f32 to vector<16x1xf32>
    %199 = arith.divf %197, %198 : vector<16x1xf32>
    %200 = arith.mulf %193, %193 : vector<16x32xf32>
    %cst_85 = arith.constant dense<0.000000e+00> : vector<16xf32>
    %201 = vector.multi_reduction <add>, %200, %cst_85 [1] : vector<16x32xf32> to vector<16xf32>
    %202 = vector.shape_cast %201 : vector<16xf32> to vector<16x1xf32>
    %cst_86 = arith.constant 3.200000e+01 : f32
    %203 = vector.broadcast %cst_86 : f32 to vector<16x1xf32>
    %204 = arith.divf %202, %203 : vector<16x1xf32>
    %205 = arith.mulf %199, %199 : vector<16x1xf32>
    %206 = arith.subf %204, %205 : vector<16x1xf32>
    %cst_87 = arith.constant 0.000000e+00 : f32
    %207 = vector.broadcast %cst_87 : f32 to vector<16x1xf32>
    %208 = arith.maximumf %206, %207 : vector<16x1xf32>
    %209 = vector.broadcast %199 : vector<16x1xf32> to vector<16x32xf32>
    %210 = arith.subf %193, %209 : vector<16x32xf32>
    %cst_88 = arith.constant 9.99999996E-13 : f32
    %211 = vector.broadcast %cst_88 : f32 to vector<16x1xf32>
    %212 = arith.addf %208, %211 : vector<16x1xf32>
    %213 = math.rsqrt %212 : vector<16x1xf32>
    %214 = vector.broadcast %213 : vector<16x1xf32> to vector<16x32xf32>
    %215 = arith.mulf %210, %214 : vector<16x32xf32>
    %216 = vector.broadcast %194 : vector<1x32xf32> to vector<16x32xf32>
    %217 = arith.mulf %215, %216 : vector<16x32xf32>
    %218 = vector.broadcast %195 : vector<1x32xf32> to vector<16x32xf32>
    %219 = arith.addf %217, %218 : vector<16x32xf32>
    %220 = arith.truncf %219 : vector<16x32xf32> to vector<16x32xbf16>
    %c1_89 = arith.constant 1 : index
    %c0_90 = arith.constant 0 : index
    %c0_91 = arith.constant 0 : index
    %221 = vector.load %arg5[%c1_89, %c0_90, %c0_91] : memref<2x32x128xbf16, #tpu.memory_space<vmem>>, vector<1x32x128xbf16>
    %222 = vector.shape_cast %221 : vector<1x32x128xbf16> to vector<32x128xbf16>
    %cst_92 = arith.constant dense<0.000000e+00> : vector<16x128xf32>
    %223 = tpu.matmul %220, %222, %cst_92 {dimension_numbers = #tpu.dot_dimension_numbers<[1], [0], [0], [1], [0, 0, 1, 1], [], []>} : vector<16x32xbf16>, vector<32x128xbf16>, vector<16x128xf32> -> vector<16x128xf32>
    %c1_93 = arith.constant 1 : index
    %c0_94 = arith.constant 0 : index
    %224 = vector.load %arg10[%c1_93, %c0_94] : memref<4x256xf32, #tpu.memory_space<vmem>>, vector<1x128xf32>
    %225 = vector.broadcast %224 : vector<1x128xf32> to vector<16x128xf32>
    %226 = arith.addf %223, %225 : vector<16x128xf32>
    %227 = arith.mulf %226, %226 : vector<16x128xf32>
    %228 = arith.mulf %226, %227 : vector<16x128xf32>
    %cst_95 = arith.constant 4.471500e-02 : f32
    %229 = vector.broadcast %cst_95 : f32 to vector<16x128xf32>
    %230 = arith.mulf %229, %228 : vector<16x128xf32>
    %231 = arith.addf %226, %230 : vector<16x128xf32>
    %cst_96 = arith.constant 0.797884583 : f32
    %232 = vector.broadcast %cst_96 : f32 to vector<16x128xf32>
    %233 = arith.mulf %232, %231 : vector<16x128xf32>
    %234 = math.tanh %233 : vector<16x128xf32>
    %cst_97 = arith.constant 1.000000e+00 : f32
    %235 = vector.broadcast %cst_97 : f32 to vector<16x128xf32>
    %236 = arith.addf %235, %234 : vector<16x128xf32>
    %cst_98 = arith.constant 5.000000e-01 : f32
    %237 = vector.broadcast %cst_98 : f32 to vector<16x128xf32>
    %238 = arith.mulf %237, %236 : vector<16x128xf32>
    %239 = arith.mulf %226, %238 : vector<16x128xf32>
    %240 = arith.truncf %239 : vector<16x128xf32> to vector<16x128xbf16>
    %c1_99 = arith.constant 1 : index
    %c0_100 = arith.constant 0 : index
    %c0_101 = arith.constant 0 : index
    %241 = vector.load %arg6[%c1_99, %c0_100, %c0_101] : memref<2x128x32xbf16, #tpu.memory_space<vmem>>, vector<1x128x32xbf16>
    %242 = vector.shape_cast %241 : vector<1x128x32xbf16> to vector<128x32xbf16>
    %cst_102 = arith.constant dense<0.000000e+00> : vector<16x32xf32>
    %243 = tpu.matmul %240, %242, %cst_102 {dimension_numbers = #tpu.dot_dimension_numbers<[1], [0], [0], [1], [0, 0, 1, 1], [], []>} : vector<16x128xbf16>, vector<128x32xbf16>, vector<16x32xf32> -> vector<16x32xf32>
    %c12 = arith.constant 12 : index
    %c0_103 = arith.constant 0 : index
    %244 = vector.load %arg9[%c12, %c0_103] : memref<13x32xf32, #tpu.memory_space<vmem>>, vector<1x32xf32>
    %245 = vector.broadcast %244 : vector<1x32xf32> to vector<16x32xf32>
    %246 = arith.addf %243, %245 : vector<16x32xf32>
    %247 = arith.addf %193, %246 : vector<16x32xf32>
    %248 = tpu.iota {dimensions = array<i32: 0>} : vector<2x16xi32>
    %249 = tpu.iota {dimensions = array<i32: 1>} : vector<2x16xi32>
    %c3_i32_104 = arith.constant 3 : i32
    %250 = vector.broadcast %c3_i32_104 : i32 to vector<2x16xi32>
    %251 = arith.shrsi %249, %250 : vector<2x16xi32>
    %252 = arith.cmpi eq, %248, %251 : vector<2x16xi32>
    %cst_105 = arith.constant 1.250000e-01 : f32
    %cst_106 = arith.constant 0.000000e+00 : f32
    %253 = vector.broadcast %cst_105 : f32 to vector<2x16xf32>
    %254 = vector.broadcast %cst_106 : f32 to vector<2x16xf32>
    %255 = arith.select %252, %253, %254 : vector<2x16xi1>, vector<2x16xf32>
    %256 = arith.truncf %255 : vector<2x16xf32> to vector<2x16xbf16>
    %257 = arith.truncf %247 : vector<16x32xf32> to vector<16x32xbf16>
    %cst_107 = arith.constant dense<0.000000e+00> : vector<2x32xf32>
    %258 = tpu.matmul %256, %257, %cst_107 {dimension_numbers = #tpu.dot_dimension_numbers<[1], [0], [0], [1], [0, 0, 1, 1], [], []>} : vector<2x16xbf16>, vector<16x32xbf16>, vector<2x32xf32> -> vector<2x32xf32>
    %259 = arith.truncf %258 : vector<2x32xf32> to vector<2x32xbf16>
    %c0_108 = arith.constant 0 : index
    %c0_109 = arith.constant 0 : index
    %260 = vector.load %arg7[%c0_108, %c0_109] : memref<32x256xbf16, #tpu.memory_space<vmem>>, vector<32x256xbf16>
    %cst_110 = arith.constant dense<0.000000e+00> : vector<2x256xf32>
    %261 = tpu.matmul %259, %260, %cst_110 {dimension_numbers = #tpu.dot_dimension_numbers<[1], [0], [0], [1], [0, 0, 1, 1], [], []>} : vector<2x32xbf16>, vector<32x256xbf16>, vector<2x256xf32> -> vector<2x256xf32>
    %c3_111 = arith.constant 3 : index
    %c0_112 = arith.constant 0 : index
    %262 = vector.load %arg10[%c3_111, %c0_112] : memref<4x256xf32, #tpu.memory_space<vmem>>, vector<1x256xf32>
    %263 = vector.broadcast %262 : vector<1x256xf32> to vector<2x256xf32>
    %264 = arith.addf %261, %263 : vector<2x256xf32>
    %c0_113 = arith.constant 0 : index
    %c0_114 = arith.constant 0 : index
    %265 = vector.load %arg11[%c0_113, %c0_114] : memref<2x256xf32, #tpu.memory_space<vmem>>, vector<2x256xf32>
    tpu.vector_store %arg11[%c0_113, %c0_114], %264 {strides = array<i32>} : memref<2x256xf32, #tpu.memory_space<vmem>>, vector<2x256xf32>,
    %266 = arith.truncf %264 : vector<2x256xf32> to vector<2x256xbf16>
    %c0_115 = arith.constant 0 : index
    %c0_116 = arith.constant 0 : index
    %267 = vector.load %arg8[%c0_115, %c0_116] : memref<256x128xbf16, #tpu.memory_space<vmem>>, vector<256x128xbf16>
    %cst_117 = arith.constant dense<0.000000e+00> : vector<2x128xf32>
    %268 = tpu.matmul %266, %267, %cst_117 {dimension_numbers = #tpu.dot_dimension_numbers<[1], [0], [0], [1], [0, 0, 1, 1], [], []>} : vector<2x256xbf16>, vector<256x128xbf16>, vector<2x128xf32> -> vector<2x128xf32>
    %c2_118 = arith.constant 2 : index
    %c0_119 = arith.constant 0 : index
    %269 = vector.load %arg10[%c2_118, %c0_119] : memref<4x256xf32, #tpu.memory_space<vmem>>, vector<1x128xf32>
    %270 = vector.broadcast %269 : vector<1x128xf32> to vector<2x128xf32>
    %271 = arith.addf %268, %270 : vector<2x128xf32>
    %c0_120 = arith.constant 0 : index
    %c0_121 = arith.constant 0 : index
    %272 = vector.load %arg12[%c0_120, %c0_121] : memref<2x128xf32, #tpu.memory_space<vmem>>, vector<2x128xf32>
    tpu.vector_store %arg12[%c0_120, %c0_121], %271 {strides = array<i32>} : memref<2x128xf32, #tpu.memory_space<vmem>>, vector<2x128xf32>,
    return
  }
}

</mosaic_0001>

<bundles_post_ra>
// kernel: vision_model_forward.1
= control target key start
LH: loop header
LB: loop body
LE: loop exit
PB: predicated region body
PF: predicated region fallthrough
CT: control target
= control target key end

     0   :  { %18 = vsyncpa [#allocation3], 0  ;;  %s4487_s0 = inlined_call_operand.vmem [shape: bf16[16,384], index: 0, kind: input, shape index: {}]   ;;  %s4488_s1 = inlined_call_operand.vmem [shape: f32[16,32], index: 1, kind: input, shape index: {}]   ;;  %s4489_s2 = inlined_call_operand.vmem [shape: bf16[384,32], index: 2, kind: input, shape index: {}]   ;;  %s4490_s3 = inlined_call_operand.vmem [shape: bf16[2,12,32,8], index: 3, kind: input, shape index: {}]   ;;  %s4491_s4 = inlined_call_operand.vmem [shape: bf16[2,4,8,32], index: 4, kind: input, shape index: {}]   ;;  %s4492_s5 = inlined_call_operand.vmem [shape: bf16[2,32,128], index: 5, kind: input, shape index: {}]   ;;  %s4493_s6 = inlined_call_operand.vmem [shape: bf16[2,128,32], index: 6, kind: input, shape index: {}]   ;;  %s4494_s7 = inlined_call_operand.vmem [shape: bf16[32,256], index: 7, kind: input, shape index: {}]   ;;  %s4495_s8 = inlined_call_operand.vmem [shape: bf16[256,128], index: 8, kind: input, shape index: {}]   ;;  %s4496_s9 = inlined_call_operand.vmem [shape: f32[13,32], index: 9, kind: input, shape index: {}]   ;;  %s4497_s10 = inlined_call_operand.vmem [shape: f32[4,256], index: 10, kind: input, shape index: {}]   ;;  %s4498_s11 = inlined_call_operand.hbm [shape: f32[2,256], index: 11, kind: output, shape index: {0}]   ;;  %s4499_s12 = inlined_call_operand.hbm [shape: f32[2,128], index: 12, kind: output, shape index: {1}]  }
   0x1   :  { %v3419_v0 = vld [vmem:[%s4489_s2 + $0x38] sm:$0xff]  ;;  %v3418_v3 = vld [vmem:[%s4489_s2 + $0x30] sm:$0xff]  ;;  %v3417_v6 = vld [vmem:[%s4489_s2 + $0x28] sm:$0xff] }
   0x2   :  { %v3427_v1 = vld [vmem:[%s4489_s2 + $0x78] sm:$0xff]  ;;  %257 = vmatpush.bf16.msra.mxu0 %v3419_v0  ;;  %v3426_v4 = vld [vmem:[%s4489_s2 + $0x70] sm:$0xff]  ;;  %v3425_v7 = vld [vmem:[%s4489_s2 + $0x68] sm:$0xff] }
   0x3   :  { %v3435_v2 = vld [vmem:[%s4489_s2 + $0xb8] sm:$0xff]  ;;  %271 = vmatpush.bf16.msra.mxu1 %v3427_v1  ;;  %v3434_v5 = vld [vmem:[%s4489_s2 + $0xb0] sm:$0xff]  ;;  %v3433_v8 = vld [vmem:[%s4489_s2 + $0xa8] sm:$0xff] }
   0x4   :  { %285 = vmatpush.bf16.msra.mxu2 %v3435_v2  ;;  %v3416_v9 = vld [vmem:[%s4489_s2 + $0x20] sm:$0xff]  ;;  %v3415_v12 = vld [vmem:[%s4489_s2 + $0x18] sm:$0xff] }
   0x5   :  { %v3424_v10 = vld [vmem:[%s4489_s2 + $0x60] sm:$0xff]  ;;  %v3423_v13 = vld [vmem:[%s4489_s2 + $0x58] sm:$0xff] }
   0x6   :  { %258 = vmatpush.bf16.msra.mxu0 %v3418_v3  ;;  %v3432_v11 = vld [vmem:[%s4489_s2 + $0xa0] sm:$0xff]  ;;  %v3431_v14 = vld [vmem:[%s4489_s2 + $0x98] sm:$0xff] }
   0x7   :  { %272 = vmatpush.bf16.msra.mxu1 %v3426_v4 }
   0x8   :  { %286 = vmatpush.bf16.msra.mxu2 %v3434_v5 }
   0xa   :  { %259 = vmatpush.bf16.msra.mxu0 %v3417_v6 }
   0xb   :  { %273 = vmatpush.bf16.msra.mxu1 %v3425_v7 }
   0xc   :  { %287 = vmatpush.bf16.msra.mxu2 %v3433_v8 }
   0xe   :  { %260 = vmatpush.bf16.msra.mxu0 %v3416_v9 }
   0xf   :  { %274 = vmatpush.bf16.msra.mxu1 %v3424_v10 }
  0x10   :  { %288 = vmatpush.bf16.msra.mxu2 %v3432_v11 }
  0x11   :  { %19 = vsyncpa [#allocation5], 0  ;;  %v3414_v15 = vld [vmem:[%s4489_s2 + $0x10] sm:$0xff]  ;;  %v3413_v18 = vld [vmem:[%s4489_s2 + $0x8] sm:$0xff]  ;;  %vm317_vm0 = vcmask 261120   ;;  %v3687_v56 = vmov 32.0  }
  0x12   :  { %261 = vmatpush.bf16.msra.mxu0 %v3415_v12  ;;  %v3422_v16 = vld [vmem:[%s4489_s2 + $0x50] sm:$0xff]  ;;  %v3421_v19 = vld [vmem:[%s4489_s2 + $0x48] sm:$0xff]  ;;  %v3412_v21 = vld [vmem:[%s4489_s2] sm:$0xff]  ;;  %3545 = vrcp.f32 %v3687_v56  ;;  %vm785_vm8 = vcmask 64512   ;;  %vm896_vm10 = vcmask 130048   ;;  %vm1125_vm12 = vcmask 1043456  }
  0x13   :  { %275 = vmatpush.bf16.msra.mxu1 %v3423_v13  ;;  %v3430_v17 = vld [vmem:[%s4489_s2 + $0x90] sm:$0xff]  ;;  %v3429_v20 = vld [vmem:[%s4489_s2 + $0x88] sm:$0xff]  ;;  %v3420_v22 = vld [vmem:[%s4489_s2 + $0x40] sm:$0xff]  ;;  %s2798_s17 = sshll.u32 %s4498_s11, 4  ;;  %s3691_s19 = smov [#allocation4]   ;;  %s2799_s17 = int_to_ptr.hbm [resolvable:$true] %s2798_s17 }
  0x14   :  { %289 = vmatpush.bf16.msra.mxu2 %v3431_v14  ;;  %v2825_v23 = vld [vmem:[%s4487_s0] sm:$0xf]  ;;  %v3410_v24 = vld [vmem:[%s4487_s0 + $0x8] sm:$0xf0]  ;;  %v3409_v25 = vld [vmem:[%s4487_s0 + $0x4] sm:$0xf] }
  0x15   :  { %v2827_v26 = vld [vmem:[%s4487_s0 + $0xc] sm:$0xf0]  ;;  %v3428_v27 = vld [vmem:[%s4489_s2 + $0x80] sm:$0xff]  ;;  %v2833_v28 = vld [vmem:[%s4487_s0 + $0x8] sm:$0xf]  ;;  %v2826_v30 = vor.u32 %v3410_v24, %v2825_v23  ;;  %s2807_s20 = sshll.u32 %s3691_s19, 4  ;;  %s2808_s20 = int_to_ptr.vmem [resolvable:$true] %s2807_s20 }
  0x16   :  { %262 = vmatpush.bf16.msra.mxu0 %v3414_v15  ;;  %v3411_v29 = vld [vmem:[%s4487_s0 + $0x10] sm:$0xf0]  ;;  %v2830_v31 = vor.u32 %v3409_v25, %v2827_v26  ;;  %v3529_v33 = vld [vmem:[%s4496_s9] ss:$0 sm:$0xff]  ;;  %v300_v50 = vld [vmem:[%s4488_s1 + $0x8] sm:$0xff]  ;;  %s2809_s23 = sshll.u32 %s4499_s12, 4  ;;  %s2810_s23 = int_to_ptr.hbm [resolvable:$true] %s2809_s23 }
  0x17   :  { %276 = vmatpush.bf16.msra.mxu1 %v3422_v16  ;;  %v2834_v32 = vor.u32 %v3411_v29, %v2833_v28  ;;  %v299_v39 = vld [vmem:[%s4488_s1] sm:$0xff]  ;;  %v3437_v9 = vld [vmem:[%s4490_s3 + $0x8] sm:$0xff]  ;;  %v3439_v10 = vld [vmem:[%s4490_s3 + $0x18] sm:$0xff] }
  0x18   :  { %290 = vmatpush.bf16.msra.mxu2 %v3430_v17  ;;  %v3546_v57 = vpop.eup %3545  ;;  %v3445_v11 = vld [vmem:[%s4490_s3 + $0x48] sm:$0xff]  ;;  %v3447_v13 = vld [vmem:[%s4490_s3 + $0x58] sm:$0xff]  ;;  %483 = vmatpush.bf16.msra.mxu3 %v3439_v10  ;;  %v3436_v16 = vld [vmem:[%s4490_s3] sm:$0xff] }
  0x19   :  { %v325_v58 = vmul.f32 32.0, %v3546_v57  ;;  %vm329_vm1 = vweird.f32 %v3546_v57  ;;  %v3438_v17 = vld [vmem:[%s4490_s3 + $0x10] sm:$0xff]  ;;  %v3441_v25 = vld [vmem:[%s4490_s3 + $0x28] sm:$0xff]  ;;  %v3443_v26 = vld [vmem:[%s4490_s3 + $0x38] sm:$0xff] }
  0x1a   :  { %263 = vmatpush.bf16.msra.mxu0 %v3413_v18  ;;  %v3444_v18 = vld [vmem:[%s4490_s3 + $0x40] sm:$0xff]  ;;  %v3453_v28 = vld [vmem:[%s4490_s3 + $0x88] sm:$0xff]  ;;  %v3455_v29 = vld [vmem:[%s4490_s3 + $0x98] sm:$0xff] }
  0x1b   :  { %277 = vmatpush.bf16.msra.mxu1 %v3421_v19  ;;  %v326_v59 = vsub.f32 1.0, %v325_v58 }
  0x1c   :  { %291 = vmatpush.bf16.msra.mxu2 %v3429_v20  ;;  %v3446_v20 = vld [vmem:[%s4490_s3 + $0x50] sm:$0xff]  ;;  %484 = vmatpush.bf16.msra.mxu3 %v3438_v17 }
  0x1d   :  { %v327_v60 = vmul.f32 %v3546_v57, %v326_v59 }
  0x1e   :  { %264 = vmatpush.bf16.msra.mxu0 %v3412_v21 }
  0x1f   :  { %278 = vmatpush.bf16.msra.mxu1 %v3420_v22  ;;  %v328_v61 = vadd.f32 %v3546_v57, %v327_v60 }
  0x20   :  { %292 = vmatpush.bf16.msra.mxu2 %v3428_v27  ;;  %509 = vmatpush.bf16.msrb.mxu3 %v3441_v25 }
  0x21   :  { %265 = vmatmul.bf16.vlgmr.msra.gmra.mxu0 %v2826_v30  ;;  %v3870_v62 = vsel %vm329_vm1, %v3546_v57, %v328_v61  ;;  %v3440_v30 = vld [vmem:[%s4490_s3 + $0x20] sm:$0xff] }
  0x22   :  { %279 = vmatmul.bf16.vlgmr.msra.gmra.mxu1 %v2830_v31  ;;  %457 = vmatpush.bf16.msrb.mxu0 %v3437_v9  ;;  %v3442_v31 = vld [vmem:[%s4490_s3 + $0x30] sm:$0xff] }
  0x23   :  { %293 = vmatmul.bf16.vlgmr.msra.gmra.mxu2 %v2834_v32  ;;  %561 = vmatpush.bf16.msrb.mxu1 %v3445_v11 }
  0x24   :  { %587 = vmatpush.bf16.msrb.mxu2 %v3447_v13  ;;  %510 = vmatpush.bf16.msrb.mxu3 %v3440_v30 }
  0x26   :  { %458 = vmatpush.bf16.msrb.mxu0 %v3436_v16 }
  0x27   :  { %562 = vmatpush.bf16.msrb.mxu1 %v3444_v18 }
  0x28   :  { %588 = vmatpush.bf16.msrb.mxu2 %v3446_v20 }
  0x2a   :  { %535 = vmatpush.bf16.msra.mxu0 %v3443_v26 }
  0x2b   :  { %665 = vmatpush.bf16.msra.mxu1 %v3453_v28 }
  0x2c   :  { %691 = vmatpush.bf16.msra.mxu2 %v3455_v29 }
  0x2e   :  { %536 = vmatpush.bf16.msra.mxu0 %v3442_v31 }
  0x9e   :  { %v266_v34 = vpop.f32.mrf.mxu0 }
  0x9f   :  { %v267_v35 = vadd.f32 %v3529_v33, %v266_v34  ;;  %v280_v36 = vpop.f32.mrf.mxu1  ;;  %v3454_v34 = vld [vmem:[%s4490_s3 + $0x90] sm:$0xff] }
  0xa0   :  { %692 = vmatpush.bf16.msra.mxu2 %v3454_v34 }
  0xa1   :  { %v281_v37 = vadd.f32 %v280_v36, %v267_v35 }
  0xa6   :  { %v294_v38 = vpop.f32.mrf.mxu2  ;;  %v268_v41 = vpop.f32.mrf.mxu0 }
  0xa7   :  { %v295_v40 = vadd.f32 %v294_v38, %v281_v37  ;;  %v269_v43 = vadd.f32 %v3529_v33, %v268_v41  ;;  %v282_v46 = vpop.f32.mrf.mxu1  ;;  %v3452_v33 = vld [vmem:[%s4490_s3 + $0x80] sm:$0xff] }
  0xa8   :  { %666 = vmatpush.bf16.msra.mxu1 %v3452_v33 }
  0xa9   :  { %v3853_v42 = vadd.f32 %v299_v39, %v295_v40  ;;  %v283_v47 = vadd.f32 %v282_v46, %v269_v43  ;;  %v3530_v43 = vld [vmem:[%s4496_s9 + $0x1] ss:$0 sm:$0xff] }
  0xab   :  { %v318_v44 = vsel %vm317_vm0, %v3853_v42, 0.0  ;;  %v333_v45 = vmul.f32 %v3853_v42, %v3853_v42 }
  0xac   :  { %319 = vadd.xlane.f32.xlu0 %v318_v44 }
  0xad   :  { %v335_v48 = vsel %vm317_vm0, %v333_v45, 0.0 }
  0xae   :  { %v296_v49 = vpop.f32.mrf.mxu2  ;;  %336 = vadd.xlane.f32.xlu1 %v335_v48 }
  0xaf   :  { %v297_v51 = vadd.f32 %v296_v49, %v283_v47  ;;  %v3531_v47 = vld [vmem:[%s4496_s9 + $0x2] ss:$0 sm:$0xff] }
  0xb1   :  { %v3863_v52 = vadd.f32 %v300_v50, %v297_v51 }
  0xb3   :  { %v321_v53 = vsel %vm317_vm0, %v3863_v52, 0.0  ;;  %v334_v54 = vmul.f32 %v3863_v52, %v3863_v52 }
  0xb4   :  { %322 = vadd.xlane.f32.xlu0 %v321_v53 }
  0xb5   :  { %v338_v55 = vsel %vm317_vm0, %v334_v54, 0.0 }
  0xb6   :  { %339 = vadd.xlane.f32.xlu1 %v338_v55 }
 0x11f   :  { %v320_v63 = vpop.xlane.xlu0 %319 }
 0x120   :  { %v3873_v0 = vmul.f32 %v3870_v62, %v320_v63  ;;  %v3449_v63 = vld [vmem:[%s4490_s3 + $0x68] sm:$0xff] }
 0x121   :  { %v337_v1 = vpop.xlane.xlu1 %336 }
 0x122   :  { %v343_v2 = vmul.f32 %v3873_v0, %v3873_v0  ;;  %v341_v3 = vmul.f32 %v337_v1, %v3870_v62  ;;  %v349_v39 = vsub.f32 %v3853_v42, %v3873_v0  ;;  %v3451_v0 = vld [vmem:[%s4490_s3 + $0x78] sm:$0xff]  ;;  %v3448_v1 = vld [vmem:[%s4490_s3 + $0x60] sm:$0xff] }
 0x124   :  { %v345_v4 = vsub.f32 %v341_v3, %v343_v2  ;;  %v3450_v2 = vld [vmem:[%s4490_s3 + $0x70] sm:$0xff]  ;;  %v3457_v3 = vld [vmem:[%s4490_s3 + $0xa8] sm:$0xff] }
 0x126   :  { %v347_v5 = vmax.f32 %v345_v4, 0.0  ;;  %v3459_v4 = vld [vmem:[%s4490_s3 + $0xb8] sm:$0xff] }
 0x127   :  { %v323_v6 = vpop.xlane.xlu0 %322 }
 0x128   :  { %v351_v7 = vadd.f32 1e-12, %v347_v5  ;;  %v3879_v8 = vmul.f32 %v3870_v62, %v323_v6  ;;  %v3456_v5 = vld [vmem:[%s4490_s3 + $0xa0] sm:$0xff]  ;;  %v3458_v6 = vld [vmem:[%s4490_s3 + $0xb0] sm:$0xff] }
 0x129   :  { %v340_v12 = vpop.xlane.xlu1 %339 }
 0x12a   :  { %3547 = vrsqrt.f32 %v351_v7  ;;  %v344_v14 = vmul.f32 %v3879_v8, %v3879_v8  ;;  %v342_v15 = vmul.f32 %v340_v12, %v3870_v62  ;;  %vm359_vm3 = vweird.f32 %v351_v7 }
 0x12b   :  { %v350_v50 = vsub.f32 %v3863_v52, %v3879_v8 }
 0x12c   :  { %v346_v19 = vsub.f32 %v342_v15, %v344_v14 }
 0x12e   :  { %v348_v21 = vmax.f32 %v346_v19, 0.0 }
 0x130   :  { %v3548_v22 = vpop.eup %3547  ;;  %v352_v24 = vadd.f32 1e-12, %v348_v21 }
 0x131   :  { %v354_v23 = vmul.f32 %v3548_v22, %v351_v7  ;;  %vm360_vm2 = vweird.f32 %v3548_v22 }
 0x132   :  { %3549 = vrsqrt.f32 %v352_v24  ;;  %vm361_vm4 = vmor %vm359_vm3, %vm360_vm2  ;;  %vm369_vm6 = vweird.f32 %v352_v24 }
 0x133   :  { %v355_v27 = vmul.f32 %v3548_v22, %v354_v23 }
 0x135   :  { %v356_v32 = vmul.f32 0.5, %v355_v27 }
 0x137   :  { %v357_v35 = vsub.f32 1.5, %v356_v32 }
 0x138   :  { %v3550_v36 = vpop.eup %3549 }
 0x139   :  { %v358_v37 = vmul.f32 %v3548_v22, %v357_v35  ;;  %v364_v38 = vmul.f32 %v3550_v36, %v352_v24  ;;  %vm370_vm5 = vweird.f32 %v3550_v36 }
 0x13a   :  { %vm371_vm7 = vmor %vm369_vm6, %vm370_vm5 }
 0x13b   :  { %v362_v40 = vsel %vm361_vm4, %v3548_v22, %v358_v37  ;;  %v365_v41 = vmul.f32 %v3550_v36, %v364_v38 }
 0x13c   :  { %v373_v44 = vmul.f32 %v362_v40, %v349_v39 }
 0x13d   :  { %v366_v45 = vmul.f32 0.5, %v365_v41 }
 0x13e   :  { %v376_v48 = vmul.f32 %v3530_v43, %v373_v44 }
 0x13f   :  { %v367_v46 = vsub.f32 1.5, %v366_v45 }
 0x140   :  { %v379_v53 = vadd.f32 %v3531_v47, %v376_v48 }
 0x141   :  { %v368_v49 = vmul.f32 %v3550_v36, %v367_v46 }
 0x142   :  { %v381_v56 = vpack.c.bf16 %v379_v53, %v379_v53 }
 0x143   :  { %v372_v51 = vsel %vm371_vm7, %v3550_v36, %v368_v49 }
 0x144   :  { %v374_v54 = vmul.f32 %v372_v51, %v350_v50  ;;  %v433_v59 = vunpack.c.l.b16 %v381_v56 }
 0x146   :  { %v377_v55 = vmul.f32 %v3530_v43, %v374_v54 }
 0x148   :  { %v380_v57 = vadd.f32 %v3531_v47, %v377_v55 }
 0x14a   :  { %v382_v58 = vpack.c.bf16 %v380_v57, %v380_v57 }
 0x14c   :  { %v434_v60 = vunpack.c.l.b16 %v382_v58 }
 0x14e   :  { %v435_v61 = vpack.c.b16 %v434_v60, %v433_v59 }
 0x150   :  { %2939 = vmatmul.msk.bf16.vlgmr.msrb.gmra.mxu0 %vm317_vm0, %v435_v61  ;;  %2948 = vmatmul.msk.bf16.vlgmr.msra.gmra.mxu3 %vm317_vm0, %v435_v61 }
 0x151   :  { %2975 = vmatmul.msk.bf16.vlgmr.msrb.gmra.mxu1 %vm317_vm0, %v435_v61  ;;  %2984 = vmatmul.msk.bf16.vlgmr.msrb.gmra.mxu2 %vm317_vm0, %v435_v61 }
 0x152   :  { %613 = vmatpush.bf16.msra.mxu3 %v3449_v63  ;;  %639 = vmatpush.bf16.msrb.mxu0 %v3451_v0 }
 0x156   :  { %614 = vmatpush.bf16.msra.mxu3 %v3448_v1  ;;  %640 = vmatpush.bf16.msrb.mxu0 %v3450_v2 }
 0x160   :  { %2957 = vmatmul.msk.bf16.vlgmr.msrb.gmra.mxu3 %vm317_vm0, %v435_v61  ;;  %2966 = vmatmul.msk.bf16.vlgmr.msra.gmra.mxu0 %vm317_vm0, %v435_v61 }
 0x161   :  { %3011 = vmatmul.msk.bf16.vlgmr.msra.gmra.mxu1 %vm317_vm0, %v435_v61  ;;  %3020 = vmatmul.msk.bf16.vlgmr.msra.gmra.mxu2 %vm317_vm0, %v435_v61 }
 0x162   :  { %717 = vmatpush.bf16.msrb.mxu3 %v3457_v3  ;;  %743 = vmatpush.bf16.msra.mxu0 %v3459_v4 }
 0x166   :  { %718 = vmatpush.bf16.msrb.mxu3 %v3456_v5  ;;  %744 = vmatpush.bf16.msra.mxu0 %v3458_v6 }
 0x170   :  { %2993 = vmatmul.msk.bf16.vlgmr.msra.gmra.mxu3 %vm317_vm0, %v435_v61  ;;  %3002 = vmatmul.msk.bf16.vlgmr.msrb.gmra.mxu0 %vm317_vm0, %v435_v61 }
 0x180   :  { %3029 = vmatmul.msk.bf16.vlgmr.msrb.gmra.mxu3 %vm317_vm0, %v435_v61  ;;  %3038 = vmatmul.msk.bf16.vlgmr.msra.gmra.mxu0 %vm317_vm0, %v435_v61 }
 0x1cd   :  { %v460_v7 = vpop.f32.mrf.mxu0 }
 0x1ce   :  { %v564_v8 = vpop.f32.mrf.mxu1  ;;  %v751_v22 = vpack.c.bf16 %v460_v7, %v460_v7 }
 0x1cf   :  { %v759_v11 = vpack.c.bf16 %v564_v8, %v564_v8 }
 0x1d0   :  { %v777_v30 = vunpack.c.l.b16 %v751_v22 }
 0x1d1   :  { %v782_v15 = vunpack.c.l.b16 %v759_v11 }
 0x1d3   :  { %v486_v9 = vpop.f32.mrf.mxu3 }
 0x1d4   :  { %v590_v10 = vpop.f32.mrf.mxu2  ;;  %v753_v33 = vpack.c.bf16 %v486_v9, %v486_v9 }
 0x1d5   :  { %v462_v12 = vpop.f32.mrf.mxu0  ;;  %v761_v17 = vpack.c.bf16 %v590_v10, %v590_v10 }
 0x1d6   :  { %v566_v13 = vpop.f32.mrf.mxu1  ;;  %v752_v18 = vpack.c.bf16 %v462_v12, %v462_v12  ;;  %v808_v43 = vunpack.c.l.b16 %v753_v33 }
 0x1d7   :  { %v760_v14 = vpack.c.bf16 %v566_v13, %v566_v13  ;;  %v813_v27 = vunpack.c.l.b16 %v761_v17 }
 0x1d8   :  { %v778_v28 = vunpack.c.l.b16 %v752_v18 }
 0x1d9   :  { %v783_v16 = vunpack.c.l.b16 %v760_v14 }
 0x1da   :  { %v779_v34 = vpack.c.b16 %v778_v28, %v777_v30 }
 0x1db   :  { %v784_v19 = vpack.c.b16 %v783_v16, %v782_v15  ;;  %v488_v20 = vpop.f32.mrf.mxu3 }
 0x1dc   :  { %v592_v21 = vpop.f32.mrf.mxu2  ;;  %v754_v31 = vpack.c.bf16 %v488_v20, %v488_v20 }
 0x1dd   :  { %v762_v23 = vpack.c.bf16 %v592_v21, %v592_v21  ;;  %v538_v24 = vpop.f32.mrf.mxu0  ;;  %v790_v25 = vsel %vm785_vm8, %v784_v19, 0 }
 0x1de   :  { %v668_v26 = vpop.f32.mrf.mxu1  ;;  %799 = vmatpush.bf16.xpose.msrb.mxu1 %v790_v25  ;;  %v809_v38 = vunpack.c.l.b16 %v754_v31  ;;  %v757_v5 = vpack.c.bf16 %v538_v24, %v538_v24 }
 0x1df   :  { %v814_v29 = vunpack.c.l.b16 %v762_v23  ;;  %v767_v39 = vpack.c.bf16 %v668_v26, %v668_v26 }
 0x1e0   :  { %v810_v45 = vpack.c.b16 %v809_v38, %v808_v43  ;;  %v868_v12 = vunpack.c.l.b16 %v757_v5 }
 0x1e1   :  { %v815_v32 = vpack.c.b16 %v814_v29, %v813_v27  ;;  %v1000_v46 = vunpack.c.l.b16 %v767_v39 }
 0x1e3   :  { %v512_v35 = vpop.f32.mrf.mxu3  ;;  %v820_v36 = vsel %vm785_vm8, %v815_v32, 0 }
 0x1e4   :  { %v694_v37 = vpop.f32.mrf.mxu2  ;;  %829 = vmatpush.bf16.xpose.msrb.mxu2 %v820_v36  ;;  %v755_v15 = vpack.c.bf16 %v512_v35, %v512_v35 }
 0x1e5   :  { %3039 = vmatmul.msk.bf16.vlgmr.msrb.gmra.mxu1 %vm785_vm8, %v779_v34  ;;  %v540_v40 = vpop.f32.mrf.mxu0  ;;  %v769_v48 = vpack.c.bf16 %v694_v37, %v694_v37  ;;  %v303_v34 = vlaneseq }
 0x1e6   :  { %v670_v41 = vpop.f32.mrf.mxu1  ;;  %v758_v1 = vpack.c.bf16 %v540_v40, %v540_v40  ;;  %v838_v22 = vunpack.c.l.b16 %v755_v15  ;;  %v3688_v40 = vmov -1e+30  }
 0x1e7   :  { %v768_v44 = vpack.c.bf16 %v670_v41, %v670_v41  ;;  %v1028_v55 = vunpack.c.l.b16 %v769_v48  ;;  %v3986_v35 = vshrl.u32 %v303_v34, 7  ;;  %v307_v36 = vand.u32 127, %v303_v34 }
 0x1e8   :  { %v869_v9 = vunpack.c.l.b16 %v758_v1 }
 0x1e9   :  { %v1001_v47 = vunpack.c.l.b16 %v768_v44  ;;  %v308_v37 = vshra.s32 %v3986_v35, 3  ;;  %v3989_v38 = vshra.s32 %v307_v36, 3  ;;  %v305_v39 = vadd.s32 8, %v3986_v35 }
 0x1ea   :  { %v870_v16 = vpack.c.b16 %v869_v9, %v868_v12 }
 0x1eb   :  { %v1002_v49 = vpack.c.b16 %v1001_v47, %v1000_v46  ;;  %3040 = vmatmul.msk.bf16.vlgmr.msrb.gmra.mxu2 %vm785_vm8, %v810_v45  ;;  %v514_v50 = vpop.f32.mrf.mxu3  ;;  %vm311_vm9 = vcmp.eq.s32.totalorder %v308_v37, %v3989_v38  ;;  %v309_v44 = vshra.s32 %v305_v39, 3 }
 0x1ec   :  { %v696_v51 = vpop.f32.mrf.mxu2  ;;  %v756_v13 = vpack.c.bf16 %v514_v50, %v514_v50  ;;  %v3993_v41 = vsel %vm311_vm9, 0.0, %v3688_v40 }
 0x1ed   :  { %v770_v53 = vpack.c.bf16 %v696_v51, %v696_v51  ;;  %1014 = vmatpush.bf16.msra.mxu1 %v1002_v49  ;;  %v642_v54 = vpop.f32.mrf.mxu0  ;;  %vm312_vm11 = vcmp.eq.s32.totalorder %v309_v44, %v3989_v38 }
 0x1ee   :  { %v765_v59 = vpack.c.bf16 %v642_v54, %v642_v54  ;;  %v839_v19 = vunpack.c.l.b16 %v756_v13  ;;  %v3998_v47 = vsel %vm312_vm11, 0.0, %v3688_v40 }
 0x1ef   :  { %v1029_v56 = vunpack.c.l.b16 %v770_v53 }
 0x1f0   :  { %v873_v63 = vunpack.c.l.b16 %v765_v59  ;;  %v840_v24 = vpack.c.b16 %v839_v19, %v838_v22 }
 0x1f1   :  { %v1030_v57 = vpack.c.b16 %v1029_v56, %v1028_v55 }
 0x1f3   :  { %1042 = vmatpush.bf16.msra.mxu2 %v1030_v57  ;;  %v616_v58 = vpop.f32.mrf.mxu3 }
 0x1f4   :  { %v763_v2 = vpack.c.bf16 %v616_v58, %v616_v58 }
 0x1f5   :  { %v644_v60 = vpop.f32.mrf.mxu0 }
 0x1f6   :  { %v766_v61 = vpack.c.bf16 %v644_v60, %v644_v60  ;;  %v843_v10 = vunpack.c.l.b16 %v763_v2 }
 0x1f8   :  { %v874_v0 = vunpack.c.l.b16 %v766_v61 }
 0x1fa   :  { %v875_v3 = vpack.c.b16 %v874_v0, %v873_v63 }
 0x1fb   :  { %v618_v4 = vpop.f32.mrf.mxu3 }
 0x1fc   :  { %v764_v6 = vpack.c.bf16 %v618_v4, %v618_v4  ;;  %v880_v7 = vsel %vm785_vm8, %v875_v3, 0 }
 0x1fd   :  { %v746_v8 = vpop.f32.mrf.mxu0  ;;  %889 = vmatpush.bf16.xpose.msrb.mxu0 %v880_v7 }
 0x1fe   :  { %v844_v11 = vunpack.c.l.b16 %v764_v6  ;;  %v773_v20 = vpack.c.bf16 %v746_v8, %v746_v8 }
 0x200   :  { %v845_v14 = vpack.c.b16 %v844_v11, %v843_v10  ;;  %v1084_v25 = vunpack.c.l.b16 %v773_v20 }
 0x202   :  { %v850_v17 = vsel %vm785_vm8, %v845_v14, 0 }
 0x203   :  { %v720_v18 = vpop.f32.mrf.mxu3  ;;  %859 = vmatpush.bf16.xpose.msra.mxu3 %v850_v17 }
 0x204   :  { %3042 = vmatmul.msk.bf16.vlgmr.msrb.gmra.mxu0 %vm785_vm8, %v870_v16  ;;  %v771_v27 = vpack.c.bf16 %v720_v18, %v720_v18 }
 0x205   :  { %v748_v21 = vpop.f32.mrf.mxu0 }
 0x206   :  { %v774_v23 = vpack.c.bf16 %v748_v21, %v748_v21  ;;  %v1056_v31 = vunpack.c.l.b16 %v771_v27 }
 0x208   :  { %v1085_v26 = vunpack.c.l.b16 %v774_v23 }
 0x20a   :  { %v1086_v28 = vpack.c.b16 %v1085_v26, %v1084_v25  ;;  %3041 = vmatmul.msk.bf16.vlgmr.msra.gmra.mxu3 %vm785_vm8, %v840_v24 }
 0x20b   :  { %v722_v29 = vpop.f32.mrf.mxu3 }
 0x20c   :  { %v772_v30 = vpack.c.bf16 %v722_v29, %v722_v29  ;;  %1098 = vmatpush.bf16.msra.mxu0 %v1086_v28 }
 0x20e   :  { %v1057_v32 = vunpack.c.l.b16 %v772_v30 }
 0x210   :  { %v1058_v33 = vpack.c.b16 %v1057_v32, %v1056_v31 }
 0x212   :  { %1070 = vmatpush.bf16.msrb.mxu3 %v1058_v33 }
 0x262   :  { %v801_v51 = vpop.f32.mrf.mxu1 }
 0x263   :  { %v802_v53 = vadd.f32 %v801_v51, %v3993_v41 }
 0x265   :  { %v897_v54 = vsel %vm896_vm10, %v802_v53, -inf }
 0x26a   :  { %v803_v63 = vpop.f32.mrf.mxu1 }
 0x26b   :  { %v804_v0 = vadd.f32 %v803_v63, %v3998_v47 }
 0x26d   :  { %v900_v4 = vsel %vm896_vm10, %v804_v0, -inf }
 0x26e   :  { %v831_v43 = vpop.f32.mrf.mxu2 }
 0x26f   :  { %v832_v45 = vadd.f32 %v831_v43, %v3993_v41 }
 0x271   :  { %v903_v46 = vsel %vm896_vm10, %v832_v45, -inf }
 0x272   :  { %904 = vmax.xlane.f32.xlu2 %v903_v46 }
 0x276   :  { %v833_v48 = vpop.f32.mrf.mxu2 }
 0x277   :  { %v834_v49 = vadd.f32 %v833_v48, %v3998_v47 }
 0x279   :  { %v906_v50 = vsel %vm896_vm10, %v834_v49, -inf }
 0x27a   :  { %907 = vmax.xlane.f32.xlu2 %v906_v50 }
 0x281   :  { %v891_v55 = vpop.f32.mrf.mxu0 }
 0x282   :  { %898 = vmax.xlane.f32.xlu2 %v897_v54  ;;  %v892_v5 = vadd.f32 %v891_v55, %v3993_v41 }
 0x284   :  { %v915_v6 = vsel %vm896_vm10, %v892_v5, -inf }
 0x289   :  { %v893_v56 = vpop.f32.mrf.mxu0 }
 0x28a   :  { %v894_v57 = vadd.f32 %v893_v56, %v3998_v47 }
 0x28c   :  { %v918_v58 = vsel %vm896_vm10, %v894_v57, -inf }
 0x28d   :  { %v861_v59 = vpop.f32.mrf.mxu3  ;;  %919 = vmax.xlane.f32.xlu2 %v918_v58 }
 0x28e   :  { %v862_v60 = vadd.f32 %v861_v59, %v3993_v41 }
 0x290   :  { %v909_v61 = vsel %vm896_vm10, %v862_v60, -inf }
 0x291   :  { %910 = vmax.xlane.f32.xlu0 %v909_v61 }
 0x295   :  { %v863_v1 = vpop.f32.mrf.mxu3 }
 0x296   :  { %v864_v2 = vadd.f32 %v863_v1, %v3998_v47 }
 0x298   :  { %v912_v3 = vsel %vm896_vm10, %v864_v2, -inf }
 0x299   :  { %913 = vmax.xlane.f32.xlu1 %v912_v3  ;;  %901 = vmax.xlane.f32.xlu0 %v900_v4 }
 0x2a1   :  { %916 = vmax.xlane.f32.xlu1 %v915_v6 }
 0x2e5   :  { %v905_v7 = vpop.xlane.xlu2 %904 }
 0x2e6   :  { %v923_v8 = vsub.f32 %v832_v45, %v905_v7 }
 0x2e8   :  { %v933_v9 = vmul.f32 1.442695, %v923_v8 }
 0x2ea   :  { %3551 = vpow2.f32 %v933_v9 }
 0x2ed   :  { %v908_v10 = vpop.xlane.xlu2 %907 }
 0x2ee   :  { %v924_v11 = vsub.f32 %v834_v49, %v908_v10 }
 0x2f0   :  { %v3552_v12 = vpop.eup %3551  ;;  %v935_v13 = vmul.f32 1.442695, %v924_v11 }
 0x2f1   :  { %v951_v14 = vsel %vm896_vm10, %v3552_v12, 0.0 }
 0x2f2   :  { %3553 = vpow2.f32 %v935_v13  ;;  %952 = vadd.xlane.f32.xlu0 %v951_v14 }
 0x2f5   :  { %v899_v15 = vpop.xlane.xlu2 %898 }
 0x2f6   :  { %v921_v16 = vsub.f32 %v802_v53, %v899_v15 }
 0x2f8   :  { %v3554_v17 = vpop.eup %3553  ;;  %v929_v18 = vmul.f32 1.442695, %v921_v16 }
 0x2f9   :  { %v954_v19 = vsel %vm896_vm10, %v3554_v17, 0.0 }
 0x2fa   :  { %3555 = vpow2.f32 %v929_v18  ;;  %955 = vadd.xlane.f32.xlu1 %v954_v19 }
 0x300   :  { %v4016_v20 = vpop.eup %3555  ;;  %v920_v21 = vpop.xlane.xlu2 %919 }
 0x301   :  { %v928_v22 = vsub.f32 %v894_v57, %v920_v21  ;;  %v945_v23 = vsel %vm896_vm10, %v4016_v20, 0.0 }
 0x302   :  { %946 = vadd.xlane.f32.xlu1 %v945_v23 }
 0x303   :  { %v943_v24 = vmul.f32 1.442695, %v928_v22 }
 0x304   :  { %v911_v25 = vpop.xlane.xlu0 %910 }
 0x305   :  { %3557 = vpow2.f32 %v943_v24  ;;  %v925_v26 = vsub.f32 %v862_v60, %v911_v25 }
 0x307   :  { %v937_v27 = vmul.f32 1.442695, %v925_v26 }
 0x309   :  { %3559 = vpow2.f32 %v937_v27 }
 0x30b   :  { %v4020_v28 = vpop.eup %3557 }
 0x30c   :  { %v914_v29 = vpop.xlane.xlu1 %913  ;;  %v902_v30 = vpop.xlane.xlu0 %901  ;;  %v966_v31 = vsel %vm896_vm10, %v4020_v28, 0.0 }
 0x30d   :  { %v926_v32 = vsub.f32 %v864_v2, %v914_v29  ;;  %v922_v33 = vsub.f32 %v804_v0, %v902_v30  ;;  %967 = vadd.xlane.f32.xlu1 %v966_v31 }
 0x30f   :  { %v3560_v34 = vpop.eup %3559  ;;  %v939_v36 = vmul.f32 1.442695, %v926_v32  ;;  %v931_v37 = vmul.f32 1.442695, %v922_v33 }
 0x310   :  { %v957_v39 = vsel %vm896_vm10, %v3560_v34, 0.0 }
 0x311   :  { %3561 = vpow2.f32 %v939_v36  ;;  %958 = vadd.xlane.f32.xlu2 %v957_v39  ;;  %v1113_v39 = vld [vmem:[%s4491_s4] sm:$0xf] }
 0x312   :  { %3563 = vpow2.f32 %v931_v37 }
 0x314   :  { %v917_v40 = vpop.xlane.xlu1 %916 }
 0x315   :  { %v927_v43 = vsub.f32 %v892_v5, %v917_v40  ;;  %v1127_v40 = vsel %vm1125_vm12, %v1113_v39, 0 }
 0x316   :  { %1136 = vmatpush.bf16.msrb.mxu1 %v1127_v40 }
 0x317   :  { %v3562_v44 = vpop.eup %3561  ;;  %v941_v45 = vmul.f32 1.442695, %v927_v43 }
 0x318   :  { %v3564_v46 = vpop.eup %3563  ;;  %v960_v48 = vsel %vm896_vm10, %v3562_v44, 0.0 }
 0x319   :  { %3565 = vpow2.f32 %v941_v45  ;;  %961 = vadd.xlane.f32.xlu0 %v960_v48  ;;  %v948_v49 = vsel %vm896_vm10, %v3564_v46, 0.0 }
 0x31a   :  { %949 = vadd.xlane.f32.xlu2 %v948_v49 }
 0x31f   :  { %v3566_v50 = vpop.eup %3565 }
 0x320   :  { %v963_v51 = vsel %vm896_vm10, %v3566_v50, 0.0 }
 0x321   :  { %964 = vadd.xlane.f32.xlu0 %v963_v51  ;;  %v1116_v51 = vld [vmem:[%s4491_s4 + $0xc] sm:$0xf] }
 0x365   :  { %v953_v53 = vpop.xlane.xlu0 %952 }
 0x366   :  { %3567 = vrcp.f32 %v953_v53 }
 0x36c   :  { %v3568_v55 = vpop.eup %3567 }
 0x36d   :  { %v956_v54 = vpop.xlane.xlu1 %955  ;;  %v979_v56 = vmul.f32 %v3568_v55, %v3552_v12 }
 0x36e   :  { %3569 = vrcp.f32 %v956_v54  ;;  %v1202_v54 = vsel %vm1125_vm12, %v1116_v51, 0 }
 0x36f   :  { %v987_v58 = vpack.c.bf16 %v979_v56, %v979_v56  ;;  %1211 = vmatpush.bf16.msrb.mxu0 %v1202_v54 }
 0x371   :  { %v1023_v61 = vunpack.c.l.b16 %v987_v58 }
 0x374   :  { %v3570_v57 = vpop.eup %3569 }
 0x375   :  { %v980_v59 = vmul.f32 %v3570_v57, %v3554_v17  ;;  %v947_v1 = vpop.xlane.xlu1 %946 }
 0x377   :  { %v988_v60 = vpack.c.bf16 %v980_v59, %v980_v59 }
 0x379   :  { %v1024_v63 = vunpack.c.l.b16 %v988_v60 }
 0x37b   :  { %v1025_v0 = vpack.c.b16 %v1024_v63, %v1023_v61 }
 0x37d   :  { %3044 = vmatmul.msk.bf16.vlgmr.msra.gmra.mxu2 %vm896_vm10, %v1025_v0 }
 0x380   :  { %v968_v3 = vpop.xlane.xlu1 %967 }
 0x384   :  { %v959_v2 = vpop.xlane.xlu2 %958 }
 0x385   :  { %3571 = vrcp.f32 %v959_v2 }
 0x386   :  { %3573 = vrcp.f32 %v947_v1 }
 0x38b   :  { %v3572_v5 = vpop.eup %3571 }
 0x38c   :  { %v962_v4 = vpop.xlane.xlu0 %961  ;;  %v3574_v7 = vpop.eup %3573  ;;  %v981_v8 = vmul.f32 %v3572_v5, %v3560_v34 }
 0x38d   :  { %3575 = vrcp.f32 %v962_v4  ;;  %v950_v6 = vpop.xlane.xlu2 %949  ;;  %v977_v9 = vmul.f32 %v3574_v7, %v4016_v20 }
 0x38e   :  { %3577 = vrcp.f32 %v950_v6  ;;  %v989_v12 = vpack.c.bf16 %v981_v8, %v981_v8 }
 0x38f   :  { %3579 = vrcp.f32 %v968_v3  ;;  %v985_v16 = vpack.c.bf16 %v977_v9, %v977_v9 }
 0x390   :  { %v1051_v22 = vunpack.c.l.b16 %v989_v12 }
 0x391   :  { %v995_v24 = vunpack.c.l.b16 %v985_v16 }
 0x393   :  { %v3576_v10 = vpop.eup %3575 }
 0x394   :  { %v3578_v11 = vpop.eup %3577  ;;  %v982_v13 = vmul.f32 %v3576_v10, %v3562_v44  ;;  %v965_v14 = vpop.xlane.xlu0 %964 }
 0x395   :  { %v3580_v15 = vpop.eup %3579  ;;  %v978_v17 = vmul.f32 %v3578_v11, %v3564_v46  ;;  %3581 = vrcp.f32 %v965_v14  ;;  %v1115_v46 = vld [vmem:[%s4491_s4 + $0x8] sm:$0xf] }
 0x396   :  { %v990_v18 = vpack.c.bf16 %v982_v13, %v982_v13  ;;  %v984_v21 = vmul.f32 %v3580_v15, %v4020_v28  ;;  %v1114_v28 = vld [vmem:[%s4491_s4 + $0x4] sm:$0xf] }
 0x397   :  { %v986_v19 = vpack.c.bf16 %v978_v17, %v978_v17  ;;  %v1152_v36 = vsel %vm1125_vm12, %v1114_v28, 0 }
 0x398   :  { %v1052_v23 = vunpack.c.l.b16 %v990_v18  ;;  %v992_v29 = vpack.c.bf16 %v984_v21, %v984_v21  ;;  %1161 = vmatpush.bf16.msrb.mxu2 %v1152_v36 }
 0x399   :  { %v996_v25 = vunpack.c.l.b16 %v986_v19 }
 0x39a   :  { %v1053_v26 = vpack.c.b16 %v1052_v23, %v1051_v22  ;;  %v1080_v32 = vunpack.c.l.b16 %v992_v29 }
 0x39b   :  { %v3582_v27 = vpop.eup %3581  ;;  %v997_v20 = vpack.c.b16 %v996_v25, %v995_v24  ;;  %v3532_v24 = vld [vmem:[%s4496_s9 + $0x3] ss:$0 sm:$0xff] }
 0x39c   :  { %v983_v30 = vmul.f32 %v3582_v27, %v3566_v50  ;;  %3045 = vmatmul.msk.bf16.vlgmr.msrb.gmra.mxu3 %vm896_vm10, %v1053_v26  ;;  %v1177_v50 = vsel %vm1125_vm12, %v1115_v46, 0 }
 0x39d   :  { %3043 = vmatmul.msk.bf16.vlgmr.msra.gmra.mxu1 %vm896_vm10, %v997_v20  ;;  %1186 = vmatpush.bf16.msra.mxu3 %v1177_v50 }
 0x39e   :  { %v991_v31 = vpack.c.bf16 %v983_v30, %v983_v30 }
 0x3a0   :  { %v1079_v33 = vunpack.c.l.b16 %v991_v31 }
 0x3a2   :  { %v1081_v34 = vpack.c.b16 %v1080_v32, %v1079_v33 }
 0x3a4   :  { %3046 = vmatmul.msk.bf16.vlgmr.msra.gmra.mxu0 %vm896_vm10, %v1081_v34 }
 0x400   :  { %v1044_v37 = vpop.f32.mrf.mxu2 }
 0x401   :  { %v1107_v43 = vpack.c.bf16 %v1044_v37, %v1044_v37 }
 0x403   :  { %v1145_v48 = vunpack.c.l.b16 %v1107_v43 }
 0x408   :  { %v1046_v44 = vpop.f32.mrf.mxu2 }
 0x409   :  { %v1108_v45 = vpack.c.bf16 %v1046_v44, %v1046_v44 }
 0x40b   :  { %v1146_v49 = vunpack.c.l.b16 %v1108_v45 }
 0x40d   :  { %v1147_v53 = vpack.c.b16 %v1146_v49, %v1145_v48 }
 0x40f   :  { %3048 = vmatmul.msk.bf16.vlgmr.msrb.gmra.mxu2 %vm785_vm8, %v1147_v53 }
 0x41a   :  { %v1016_v55 = vpop.f32.mrf.mxu1 }
 0x41b   :  { %v1105_v57 = vpack.c.bf16 %v1016_v55, %v1016_v55 }
 0x41d   :  { %v1119_v61 = vunpack.c.l.b16 %v1105_v57 }
 0x41f   :  { %v1072_v56 = vpop.f32.mrf.mxu3 }
 0x420   :  { %v1109_v0 = vpack.c.bf16 %v1072_v56, %v1072_v56 }
 0x421   :  { %v1100_v58 = vpop.f32.mrf.mxu0 }
 0x422   :  { %v1018_v59 = vpop.f32.mrf.mxu1  ;;  %v1111_v3 = vpack.c.bf16 %v1100_v58, %v1100_v58  ;;  %v1170_v6 = vunpack.c.l.b16 %v1109_v0 }
 0x423   :  { %v1106_v60 = vpack.c.bf16 %v1018_v59, %v1018_v59  ;;  %v3460_v59 = vld [vmem:[%s4492_s5] sm:$0xff] }
 0x424   :  { %v1195_v9 = vunpack.c.l.b16 %v1111_v3 }
 0x425   :  { %v1120_v63 = vunpack.c.l.b16 %v1106_v60 }
 0x427   :  { %v1121_v1 = vpack.c.b16 %v1120_v63, %v1119_v61  ;;  %v1074_v2 = vpop.f32.mrf.mxu3 }
 0x428   :  { %v1110_v4 = vpack.c.bf16 %v1074_v2, %v1074_v2 }
 0x429   :  { %3047 = vmatmul.msk.bf16.vlgmr.msrb.gmra.mxu1 %vm785_vm8, %v1121_v1  ;;  %v1102_v5 = vpop.f32.mrf.mxu0 }
 0x42a   :  { %v1171_v7 = vunpack.c.l.b16 %v1110_v4  ;;  %v1112_v8 = vpack.c.bf16 %v1102_v5, %v1102_v5 }
 0x42c   :  { %v1172_v10 = vpack.c.b16 %v1171_v7, %v1170_v6  ;;  %v1196_v11 = vunpack.c.l.b16 %v1112_v8 }
 0x42e   :  { %v1197_v12 = vpack.c.b16 %v1196_v11, %v1195_v9  ;;  %3049 = vmatmul.msk.bf16.vlgmr.msra.gmra.mxu3 %vm785_vm8, %v1172_v10 }
 0x430   :  { %3050 = vmatmul.msk.bf16.vlgmr.msrb.gmra.mxu0 %vm785_vm8, %v1197_v12 }
 0x492   :  { %v1163_v14 = vpop.f32.mrf.mxu2 }
 0x493   :  { %v1219_v17 = vsel %vm317_vm0, %v1163_v14, 0.0 }
 0x49a   :  { %v1165_v26 = vpop.f32.mrf.mxu2 }
 0x49b   :  { %v1226_v30 = vsel %vm317_vm0, %v1165_v26, 0.0  ;;  %v3534_v26 = vld [vmem:[%s4496_s9 + $0x5] ss:$0 sm:$0xff] }
 0x4a6   :  { %v1138_v13 = vpop.f32.mrf.mxu1 }
 0x4a7   :  { %v1218_v15 = vsel %vm317_vm0, %v1138_v13, 0.0 }
 0x4a8   :  { %v1220_v18 = vadd.f32 %v1219_v17, %v1218_v15 }
 0x4ad   :  { %v1213_v16 = vpop.f32.mrf.mxu0 }
 0x4ae   :  { %v1140_v22 = vpop.f32.mrf.mxu1  ;;  %v1223_v25 = vsel %vm317_vm0, %v1213_v16, 0.0 }
 0x4af   :  { %v1225_v20 = vsel %vm317_vm0, %v1140_v22, 0.0 }
 0x4b0   :  { %v1227_v31 = vadd.f32 %v1226_v30, %v1225_v20 }
 0x4b1   :  { %v1188_v19 = vpop.f32.mrf.mxu3 }
 0x4b2   :  { %v1221_v21 = vsel %vm317_vm0, %v1188_v19, 0.0 }
 0x4b3   :  { %v1222_v23 = vadd.f32 %v1221_v21, %v1220_v18  ;;  %v3533_v18 = vld [vmem:[%s4496_s9 + $0x4] ss:$0 sm:$0xff] }
 0x4b5   :  { %v1224_v27 = vadd.f32 %v1223_v25, %v1222_v23  ;;  %v1215_v33 = vpop.f32.mrf.mxu0 }
 0x4b6   :  { %v1230_v40 = vsel %vm317_vm0, %v1215_v33, 0.0  ;;  %v3468_v33 = vld [vmem:[%s4493_s6 + $0x30] sm:$0xff] }
 0x4b7   :  { %v1234_v29 = vadd.f32 %v3532_v24, %v1224_v27 }
 0x4b9   :  { %v4064_v32 = vadd.f32 %v1234_v29, %v3853_v42  ;;  %v1190_v34 = vpop.f32.mrf.mxu3 }
 0x4ba   :  { %v1228_v28 = vsel %vm317_vm0, %v1190_v34, 0.0  ;;  %v3467_v34 = vld [vmem:[%s4493_s6 + $0x28] sm:$0xff] }
 0x4bb   :  { %v1229_v36 = vadd.f32 %v1228_v28, %v1227_v31  ;;  %v1240_v37 = vsel %vm317_vm0, %v4064_v32, 0.0  ;;  %v1248_v39 = vmul.f32 %v4064_v32, %v4064_v32  ;;  %v3469_v31 = vld [vmem:[%s4493_s6 + $0x38] sm:$0xff]  ;;  %v3466_v28 = vld [vmem:[%s4493_s6 + $0x20] sm:$0xff] }
 0x4bc   :  { %1241 = vadd.xlane.f32.xlu2 %v1240_v37  ;;  %1417 = vmatpush.bf16.msra.mxu2 %v3469_v31  ;;  %v3464_v37 = vld [vmem:[%s4493_s6 + $0x10] sm:$0xff]  ;;  %v3483_v31 = vld [vmem:[%s4490_s3 + $0x128] sm:$0xff] }
 0x4bd   :  { %v1231_v43 = vadd.f32 %v1230_v40, %v1229_v36  ;;  %v1250_v44 = vsel %vm317_vm0, %v1248_v39, 0.0  ;;  %v3465_v36 = vld [vmem:[%s4493_s6 + $0x18] sm:$0xff]  ;;  %v3463_v39 = vld [vmem:[%s4493_s6 + $0x8] sm:$0xff]  ;;  %v3535_v40 = vld [vmem:[%s4497_s10] ss:$0 sm:$0xff] }
 0x4be   :  { %1251 = vadd.xlane.f32.xlu1 %v1250_v44 }
 0x4bf   :  { %v1235_v42 = vadd.f32 %v3532_v24, %v1231_v43  ;;  %v3462_v43 = vld [vmem:[%s4493_s6] sm:$0xff] }
 0x4c0   :  { %1418 = vmatpush.bf16.msra.mxu2 %v3468_v33 }
 0x4c1   :  { %v4074_v45 = vadd.f32 %v1235_v42, %v3863_v52  ;;  %v3461_v52 = vld [vmem:[%s4492_s5 + $0x8] sm:$0xff] }
 0x4c2   :  { %1324 = vmatpush.bf16.msra.mxu1 %v3461_v52 }
 0x4c3   :  { %v1243_v46 = vsel %vm317_vm0, %v4074_v45, 0.0  ;;  %v1249_v48 = vmul.f32 %v4074_v45, %v4074_v45 }
 0x4c4   :  { %1244 = vadd.xlane.f32.xlu0 %v1243_v46  ;;  %1419 = vmatpush.bf16.msra.mxu2 %v3467_v34 }
 0x4c5   :  { %v1253_v49 = vsel %vm317_vm0, %v1249_v48, 0.0 }
 0x4c6   :  { %1254 = vadd.xlane.f32.xlu2 %v1253_v49  ;;  %1325 = vmatpush.bf16.msra.mxu1 %v3460_v59 }
 0x4c8   :  { %1420 = vmatpush.bf16.msra.mxu2 %v3466_v28  ;;  %v3470_v28 = vld [vmem:[%s4490_s3 + $0xc0] sm:$0xff] }
 0x4cc   :  { %1421 = vmatpush.bf16.msra.mxu2 %v3465_v36  ;;  %v3472_v36 = vld [vmem:[%s4490_s3 + $0xd0] sm:$0xff] }
 0x4d0   :  { %1422 = vmatpush.bf16.msra.mxu2 %v3464_v37  ;;  %v3474_v37 = vld [vmem:[%s4490_s3 + $0xe0] sm:$0xff] }
 0x4d4   :  { %1423 = vmatpush.bf16.msra.mxu2 %v3463_v39 }
 0x4d8   :  { %1424 = vmatpush.bf16.msra.mxu2 %v3462_v43 }
 0x4dc   :  { %1724 = vmatpush.bf16.msrb.mxu2 %v3483_v31 }
 0x52f   :  { %v1242_v50 = vpop.xlane.xlu2 %1241 }
 0x530   :  { %v1246_v51 = vmul.f32 %v1242_v50, %v3870_v62 }
 0x531   :  { %v1252_v53 = vpop.xlane.xlu1 %1251 }
 0x532   :  { %v1258_v54 = vmul.f32 %v1246_v51, %v1246_v51  ;;  %v1256_v55 = vmul.f32 %v1252_v53, %v3870_v62  ;;  %v1264_v16 = vsub.f32 %v4064_v32, %v1246_v51 }
 0x534   :  { %v1260_v56 = vsub.f32 %v1256_v55, %v1258_v54 }
 0x536   :  { %v1262_v57 = vmax.f32 %v1260_v56, 0.0 }
 0x537   :  { %v1245_v58 = vpop.xlane.xlu0 %1244 }
 0x538   :  { %v1266_v60 = vadd.f32 1e-12, %v1262_v57  ;;  %v1247_v61 = vmul.f32 %v1245_v58, %v3870_v62 }
 0x539   :  { %v1255_v63 = vpop.xlane.xlu2 %1254 }
 0x53a   :  { %3583 = vrsqrt.f32 %v1266_v60  ;;  %v1259_v0 = vmul.f32 %v1247_v61, %v1247_v61  ;;  %v1257_v1 = vmul.f32 %v1255_v63, %v3870_v62  ;;  %vm1274_vm14 = vweird.f32 %v1266_v60 }
 0x53b   :  { %v1265_v22 = vsub.f32 %v4074_v45, %v1247_v61 }
 0x53c   :  { %v1261_v2 = vsub.f32 %v1257_v1, %v1259_v0 }
 0x53e   :  { %v1263_v3 = vmax.f32 %v1261_v2, 0.0 }
 0x540   :  { %v3584_v4 = vpop.eup %3583  ;;  %v1267_v6 = vadd.f32 1e-12, %v1263_v3 }
 0x541   :  { %v1269_v5 = vmul.f32 %v3584_v4, %v1266_v60  ;;  %vm1275_vm13 = vweird.f32 %v3584_v4 }
 0x542   :  { %3585 = vrsqrt.f32 %v1267_v6  ;;  %vm1276_vm15 = vmor %vm1274_vm14, %vm1275_vm13  ;;  %vm1284_vm2 = vweird.f32 %v1267_v6 }
 0x543   :  { %v1270_v7 = vmul.f32 %v3584_v4, %v1269_v5  ;;  %v3536_v5 = vld [vmem:[%s4496_s9 + $0x6] ss:$0 sm:$0xff] }
 0x545   :  { %v1271_v8 = vmul.f32 0.5, %v1270_v7 }
 0x547   :  { %v1272_v9 = vsub.f32 1.5, %v1271_v8 }
 0x548   :  { %v3586_v10 = vpop.eup %3585 }
 0x549   :  { %v1273_v11 = vmul.f32 %v3584_v4, %v1272_v9  ;;  %v1279_v12 = vmul.f32 %v3586_v10, %v1267_v6  ;;  %vm1285_vm1 = vweird.f32 %v3586_v10 }
 0x54a   :  { %vm1286_vm3 = vmor %vm1284_vm2, %vm1285_vm1  ;;  %vm2544_vm2 = vcmp.eq.s32.totalorder %v3986_v35, %v3989_v38  ;;  %v3505_v35 = vld [vmem:[%s4494_s7 + $0x4] sm:$0xf0]  ;;  %v3504_v38 = vld [vmem:[%s4494_s7 + $0x4] sm:$0xf] }
 0x54b   :  { %v1280_v13 = vmul.f32 %v3586_v10, %v1279_v12  ;;  %v1277_v14 = vsel %vm1276_vm15, %v3584_v4, %v1273_v11 }
 0x54c   :  { %v1288_v19 = vmul.f32 %v1277_v14, %v1264_v16 }
 0x54d   :  { %v1281_v15 = vmul.f32 0.5, %v1280_v13 }
 0x54e   :  { %v1291_v24 = vmul.f32 %v3533_v18, %v1288_v19 }
 0x54f   :  { %v1282_v17 = vsub.f32 1.5, %v1281_v15 }
 0x550   :  { %v1294_v20 = vadd.f32 %v3534_v26, %v1291_v24 }
 0x551   :  { %v1283_v21 = vmul.f32 %v3586_v10, %v1282_v17 }
 0x553   :  { %v1287_v23 = vsel %vm1286_vm3, %v3586_v10, %v1283_v21 }
 0x554   :  { %v1289_v25 = vmul.f32 %v1287_v23, %v1265_v22 }
 0x556   :  { %v1292_v27 = vmul.f32 %v3533_v18, %v1289_v25 }
 0x558   :  { %v1295_v29 = vadd.f32 %v3534_v26, %v1292_v27  ;;  %v3471_v27 = vld [vmem:[%s4490_s3 + $0xc8] sm:$0xff] }
 0x559   :  { %1568 = vmatpush.bf16.msrb.mxu3 %v3471_v27  ;;  %v3493_v27 = vld [vmem:[%s4490_s3 + $0x178] sm:$0xff] }
 0x55a   :  { %v1296_v30 = vpack.c.bf16 %v1295_v29, %v1294_v20  ;;  %v3473_v20 = vld [vmem:[%s4490_s3 + $0xd8] sm:$0xff]  ;;  %v3475_v29 = vld [vmem:[%s4490_s3 + $0xe8] sm:$0xff] }
 0x55b   :  { %1594 = vmatpush.bf16.msra.mxu0 %v3473_v20  ;;  %1620 = vmatpush.bf16.msrb.mxu1 %v3475_v29  ;;  %v3492_v20 = vld [vmem:[%s4490_s3 + $0x170] sm:$0xff] }
 0x55c   :  { %3059 = vmatmul.msk.bf16.vlgmr.msra.gmra.mxu1 %vm317_vm0, %v1296_v30 }
 0x55d   :  { %1569 = vmatpush.bf16.msrb.mxu3 %v3470_v28 }
 0x55f   :  { %1595 = vmatpush.bf16.msra.mxu0 %v3472_v36  ;;  %1621 = vmatpush.bf16.msrb.mxu1 %v3474_v37 }
 0x5d9   :  { %v1327_v44 = vpop.f32.mrf.mxu1 }
 0x5da   :  { %v1328_v42 = vadd.f32 %v3535_v40, %v1327_v44 }
 0x5dc   :  { %v1332_v46 = vmul.f32 %v1328_v42, %v1328_v42 }
 0x5de   :  { %v1334_v48 = vmul.f32 %v1332_v46, %v1328_v42 }
 0x5e0   :  { %v1336_v49 = vmul.f32 0.044715, %v1334_v48  ;;  %v3477_v48 = vld [vmem:[%s4490_s3 + $0xf8] sm:$0xff] }
 0x5e1   :  { %v1329_v50 = vpop.f32.mrf.mxu1  ;;  %1646 = vmatpush.bf16.msra.mxu3 %v3477_v48 }
 0x5e2   :  { %v1338_v51 = vadd.f32 %v1336_v49, %v1328_v42  ;;  %v1330_v53 = vadd.f32 %v3535_v40, %v1329_v50  ;;  %v3482_v40 = vld [vmem:[%s4490_s3 + $0x120] sm:$0xff]  ;;  %v3479_v49 = vld [vmem:[%s4490_s3 + $0x108] sm:$0xff] }
 0x5e3   :  { %1725 = vmatpush.bf16.msrb.mxu2 %v3482_v40  ;;  %1672 = vmatpush.bf16.msrb.mxu0 %v3479_v49 }
 0x5e4   :  { %v1340_v54 = vmul.f32 0.7978846, %v1338_v51  ;;  %v1333_v55 = vmul.f32 %v1330_v53, %v1330_v53  ;;  %v3481_v51 = vld [vmem:[%s4490_s3 + $0x118] sm:$0xff] }
 0x5e5   :  { %1698 = vmatpush.bf16.msra.mxu1 %v3481_v51 }
 0x5e6   :  { %v1335_v56 = vmul.f32 %v1333_v55, %v1330_v53  ;;  %3587 = vtanh.f32 %v1340_v54  ;;  %v3476_v54 = vld [vmem:[%s4490_s3 + $0xf0] sm:$0xff]  ;;  %v3478_v55 = vld [vmem:[%s4490_s3 + $0x100] sm:$0xff] }
 0x5e7   :  { %1647 = vmatpush.bf16.msra.mxu3 %v3476_v54  ;;  %1673 = vmatpush.bf16.msrb.mxu0 %v3478_v55 }
 0x5e8   :  { %v1337_v52 = vmul.f32 0.044715, %v1335_v56 }
 0x5ea   :  { %v1339_v57 = vadd.f32 %v1337_v52, %v1330_v53  ;;  %v3480_v52 = vld [vmem:[%s4490_s3 + $0x110] sm:$0xff] }
 0x5eb   :  { %1699 = vmatpush.bf16.msra.mxu1 %v3480_v52 }
 0x5ec   :  { %v1341_v58 = vmul.f32 0.7978846, %v1339_v57  ;;  %v3588_v59 = vpop.eup %3587  ;;  %v3490_v57 = vld [vmem:[%s4490_s3 + $0x160] sm:$0xff] }
 0x5ed   :  { %v1344_v60 = vadd.f32 1.0, %v3588_v59 }
 0x5ee   :  { %3589 = vtanh.f32 %v1341_v58 }
 0x5ef   :  { %v1346_v63 = vmul.f32 0.5, %v1344_v60 }
 0x5f1   :  { %v1348_v2 = vmul.f32 %v1346_v63, %v1328_v42 }
 0x5f4   :  { %v3590_v61 = vpop.eup %3589 }
 0x5f5   :  { %v1345_v0 = vadd.f32 1.0, %v3590_v61 }
 0x5f7   :  { %v1347_v1 = vmul.f32 0.5, %v1345_v0 }
 0x5f9   :  { %v1349_v3 = vmul.f32 %v1347_v1, %v1330_v53  ;;  %v3491_v53 = vld [vmem:[%s4490_s3 + $0x168] sm:$0xff] }
 0x5fb   :  { %v1350_v4 = vpack.c.bf16 %v1349_v3, %v1348_v2  ;;  %v3537_v2 = vld [vmem:[%s4496_s9 + $0x7] ss:$0 sm:$0xff] }
 0x5fd   :  { %1425 = vmatmul.bf16.vlgmr.msra.gmra.mxu2 %v1350_v4 }
 0x5fe   :  { %1828 = vmatpush.bf16.msra.mxu2 %v3491_v53 }
 0x602   :  { %1829 = vmatpush.bf16.msra.mxu2 %v3490_v57 }
 0x680   :  { %v1426_v6 = vpop.f32.mrf.mxu2 }
 0x681   :  { %v1427_v7 = vadd.f32 %v3536_v5, %v1426_v6  ;;  %v3538_v6 = vld [vmem:[%s4496_s9 + $0x8] ss:$0 sm:$0xff] }
 0x683   :  { %v4131_v8 = vadd.f32 %v1427_v7, %v4064_v32 }
 0x685   :  { %v1435_v9 = vsel %vm317_vm0, %v4131_v8, 0.0  ;;  %v1443_v10 = vmul.f32 %v4131_v8, %v4131_v8 }
 0x686   :  { %1436 = vadd.xlane.f32.xlu0 %v1435_v9 }
 0x687   :  { %v1445_v11 = vsel %vm317_vm0, %v1443_v10, 0.0 }
 0x688   :  { %v1428_v12 = vpop.f32.mrf.mxu2  ;;  %1446 = vadd.xlane.f32.xlu2 %v1445_v11 }
 0x689   :  { %v1429_v13 = vadd.f32 %v3536_v5, %v1428_v12 }
 0x68b   :  { %v4139_v14 = vadd.f32 %v1429_v13, %v4074_v45 }
 0x68d   :  { %v1438_v15 = vsel %vm317_vm0, %v4139_v14, 0.0  ;;  %v1444_v32 = vmul.f32 %v4139_v14, %v4139_v14 }
 0x68e   :  { %1439 = vadd.xlane.f32.xlu1 %v1438_v15 }
 0x68f   :  { %v1448_v16 = vsel %vm317_vm0, %v1444_v32, 0.0 }
 0x690   :  { %1449 = vadd.xlane.f32.xlu0 %v1448_v16 }
 0x6f9   :  { %v1437_v17 = vpop.xlane.xlu0 %1436 }
 0x6fa   :  { %v4147_v18 = vmul.f32 %v1437_v17, %v3870_v62 }
 0x6fb   :  { %v1447_v19 = vpop.xlane.xlu2 %1446 }
 0x6fc   :  { %v1453_v21 = vmul.f32 %v4147_v18, %v4147_v18  ;;  %v1451_v45 = vmul.f32 %v1447_v19, %v3870_v62  ;;  %v1459_v63 = vsub.f32 %v4131_v8, %v4147_v18 }
 0x6fe   :  { %v1455_v22 = vsub.f32 %v1451_v45, %v1453_v21  ;;  %v3485_v45 = vld [vmem:[%s4490_s3 + $0x138] sm:$0xff] }
 0x700   :  { %v1457_v23 = vmax.f32 %v1455_v22, 0.0  ;;  %v3487_v22 = vld [vmem:[%s4490_s3 + $0x148] sm:$0xff] }
 0x701   :  { %v1440_v24 = vpop.xlane.xlu1 %1439 }
 0x702   :  { %v1461_v25 = vadd.f32 1e-12, %v1457_v23  ;;  %v4153_v26 = vmul.f32 %v1440_v24, %v3870_v62  ;;  %v3489_v23 = vld [vmem:[%s4490_s3 + $0x158] sm:$0xff]  ;;  %v3484_v24 = vld [vmem:[%s4490_s3 + $0x130] sm:$0xff] }
 0x703   :  { %v1450_v30 = vpop.xlane.xlu0 %1449 }
 0x704   :  { %3591 = vrsqrt.f32 %v1461_v25  ;;  %v1454_v33 = vmul.f32 %v4153_v26, %v4153_v26  ;;  %v1452_v34 = vmul.f32 %v1450_v30, %v3870_v62  ;;  %vm1469_vm5 = vweird.f32 %v1461_v25 }
 0x705   :  { %v1460_v10 = vsub.f32 %v4139_v14, %v4153_v26  ;;  %v3488_v26 = vld [vmem:[%s4490_s3 + $0x150] sm:$0xff] }
 0x706   :  { %v1456_v39 = vsub.f32 %v1452_v34, %v1454_v33 }
 0x708   :  { %v1458_v43 = vmax.f32 %v1456_v39, 0.0 }
 0x70a   :  { %v3592_v44 = vpop.eup %3591  ;;  %v1462_v46 = vadd.f32 1e-12, %v1458_v43 }
 0x70b   :  { %v1464_v42 = vmul.f32 %v3592_v44, %v1461_v25  ;;  %vm1470_vm4 = vweird.f32 %v3592_v44  ;;  %v3486_v25 = vld [vmem:[%s4490_s3 + $0x140] sm:$0xff] }
 0x70c   :  { %3593 = vrsqrt.f32 %v1462_v46  ;;  %vm1471_vm6 = vmor %vm1469_vm5, %vm1470_vm4  ;;  %vm1479_vm9 = vweird.f32 %v1462_v46 }
 0x70d   :  { %v1465_v50 = vmul.f32 %v3592_v44, %v1464_v42 }
 0x70f   :  { %v1466_v56 = vmul.f32 0.5, %v1465_v50 }
 0x711   :  { %v1467_v58 = vsub.f32 1.5, %v1466_v56 }
 0x712   :  { %v3594_v59 = vpop.eup %3593 }
 0x713   :  { %v1468_v60 = vmul.f32 %v3592_v44, %v1467_v58  ;;  %v1474_v61 = vmul.f32 %v3594_v59, %v1462_v46  ;;  %vm1480_vm7 = vweird.f32 %v3594_v59 }
 0x714   :  { %vm1481_vm11 = vmor %vm1479_vm9, %vm1480_vm7 }
 0x715   :  { %v1472_v0 = vsel %vm1471_vm6, %v3592_v44, %v1468_v60  ;;  %v1475_v1 = vmul.f32 %v3594_v59, %v1474_v61 }
 0x716   :  { %v1483_v3 = vmul.f32 %v1472_v0, %v1459_v63 }
 0x717   :  { %v1476_v4 = vmul.f32 0.5, %v1475_v1 }
 0x718   :  { %v1486_v7 = vmul.f32 %v3537_v2, %v1483_v3 }
 0x719   :  { %v1477_v5 = vsub.f32 1.5, %v1476_v4 }
 0x71a   :  { %v1489_v12 = vadd.f32 %v3538_v6, %v1486_v7 }
 0x71b   :  { %v1478_v9 = vmul.f32 %v3594_v59, %v1477_v5 }
 0x71c   :  { %v1491_v32 = vpack.c.bf16 %v1489_v12, %v1489_v12 }
 0x71d   :  { %v1482_v11 = vsel %vm1481_vm11, %v3594_v59, %v1478_v9 }
 0x71e   :  { %v1484_v13 = vmul.f32 %v1482_v11, %v1460_v10  ;;  %v1544_v18 = vunpack.c.l.b16 %v1491_v32 }
 0x720   :  { %v1487_v15 = vmul.f32 %v3537_v2, %v1484_v13 }
 0x722   :  { %v1490_v16 = vadd.f32 %v3538_v6, %v1487_v15 }
 0x724   :  { %v1492_v17 = vpack.c.bf16 %v1490_v16, %v1490_v16 }
 0x726   :  { %v1545_v19 = vunpack.c.l.b16 %v1492_v17 }
 0x728   :  { %v1546_v21 = vpack.c.b16 %v1545_v19, %v1544_v18 }
 0x72a   :  { %3148 = vmatmul.msk.bf16.vlgmr.msrb.gmra.mxu3 %vm317_vm0, %v1546_v21  ;;  %3157 = vmatmul.msk.bf16.vlgmr.msra.gmra.mxu0 %vm317_vm0, %v1546_v21 }
 0x72b   :  { %3166 = vmatmul.msk.bf16.vlgmr.msrb.gmra.mxu1 %vm317_vm0, %v1546_v21  ;;  %3202 = vmatmul.msk.bf16.vlgmr.msrb.gmra.mxu2 %vm317_vm0, %v1546_v21 }
 0x72c   :  { %1750 = vmatpush.bf16.msrb.mxu3 %v3485_v45  ;;  %1776 = vmatpush.bf16.msra.mxu0 %v3487_v22 }
 0x72d   :  { %1802 = vmatpush.bf16.msrb.mxu1 %v3489_v23 }
 0x730   :  { %1751 = vmatpush.bf16.msrb.mxu3 %v3484_v24  ;;  %1777 = vmatpush.bf16.msra.mxu0 %v3486_v25 }
 0x731   :  { %1803 = vmatpush.bf16.msrb.mxu1 %v3488_v26 }
 0x73a   :  { %3175 = vmatmul.msk.bf16.vlgmr.msra.gmra.mxu3 %vm317_vm0, %v1546_v21  ;;  %3184 = vmatmul.msk.bf16.vlgmr.msrb.gmra.mxu0 %vm317_vm0, %v1546_v21 }
 0x73b   :  { %3193 = vmatmul.msk.bf16.vlgmr.msra.gmra.mxu1 %vm317_vm0, %v1546_v21  ;;  %3238 = vmatmul.msk.bf16.vlgmr.msra.gmra.mxu2 %vm317_vm0, %v1546_v21 }
 0x73c   :  { %1854 = vmatpush.bf16.msra.mxu3 %v3493_v27 }
 0x740   :  { %1855 = vmatpush.bf16.msra.mxu3 %v3492_v20 }
 0x74a   :  { %3211 = vmatmul.msk.bf16.vlgmr.msrb.gmra.mxu3 %vm317_vm0, %v1546_v21  ;;  %3220 = vmatmul.msk.bf16.vlgmr.msra.gmra.mxu0 %vm317_vm0, %v1546_v21 }
 0x74b   :  { %3229 = vmatmul.msk.bf16.vlgmr.msrb.gmra.mxu1 %vm317_vm0, %v1546_v21 }
 0x75a   :  { %3247 = vmatmul.msk.bf16.vlgmr.msra.gmra.mxu3 %vm317_vm0, %v1546_v21 }
 0x7a7   :  { %v1597_v29 = vpop.f32.mrf.mxu0 }
 0x7a8   :  { %v1623_v30 = vpop.f32.mrf.mxu1  ;;  %v1864_v15 = vpack.c.bf16 %v1597_v29, %v1597_v29 }
 0x7a9   :  { %v1866_v50 = vpack.c.bf16 %v1623_v30, %v1623_v30 }
 0x7aa   :  { %v1918_v24 = vunpack.c.l.b16 %v1864_v15 }
 0x7ab   :  { %v1948_v60 = vunpack.c.l.b16 %v1866_v50 }
 0x7ad   :  { %v1571_v31 = vpop.f32.mrf.mxu3 }
 0x7ae   :  { %v1727_v33 = vpop.f32.mrf.mxu2  ;;  %v1862_v11 = vpack.c.bf16 %v1571_v31, %v1571_v31 }
 0x7af   :  { %v1599_v34 = vpop.f32.mrf.mxu0  ;;  %v1874_v36 = vpack.c.bf16 %v1727_v33, %v1727_v33 }
 0x7b0   :  { %v1625_v28 = vpop.f32.mrf.mxu1  ;;  %v1865_v6 = vpack.c.bf16 %v1599_v34, %v1599_v34  ;;  %v1888_v23 = vunpack.c.l.b16 %v1862_v11 }
 0x7b1   :  { %v1953_v42 = vunpack.c.l.b16 %v1874_v36  ;;  %v1867_v48 = vpack.c.bf16 %v1625_v28, %v1625_v28 }
 0x7b2   :  { %v1919_v21 = vunpack.c.l.b16 %v1865_v6 }
 0x7b3   :  { %v1949_v56 = vunpack.c.l.b16 %v1867_v48 }
 0x7b4   :  { %v1920_v27 = vpack.c.b16 %v1919_v21, %v1918_v24 }
 0x7b5   :  { %v1573_v37 = vpop.f32.mrf.mxu3  ;;  %v1950_v1 = vpack.c.b16 %v1949_v56, %v1948_v60 }
 0x7b6   :  { %v1729_v39 = vpop.f32.mrf.mxu2  ;;  %v1863_v4 = vpack.c.bf16 %v1573_v37, %v1573_v37 }
 0x7b7   :  { %v1875_v40 = vpack.c.bf16 %v1729_v39, %v1729_v39  ;;  %v1675_v43 = vpop.f32.mrf.mxu0 }
 0x7b8   :  { %v1701_v44 = vpop.f32.mrf.mxu1  ;;  %v1870_v54 = vpack.c.bf16 %v1675_v43, %v1675_v43  ;;  %v1889_v18 = vunpack.c.l.b16 %v1863_v4 }
 0x7b9   :  { %v1954_v46 = vunpack.c.l.b16 %v1875_v40  ;;  %v1872_v52 = vpack.c.bf16 %v1701_v44, %v1701_v44 }
 0x7ba   :  { %v1893_v63 = vunpack.c.l.b16 %v1870_v54  ;;  %v1890_v26 = vpack.c.b16 %v1889_v18, %v1888_v23 }
 0x7bb   :  { %v1955_v49 = vpack.c.b16 %v1954_v46, %v1953_v42  ;;  %v1923_v2 = vunpack.c.l.b16 %v1872_v52 }
 0x7bd   :  { %v4252_v51 = vpop.f32.mrf.mxu3  ;;  %v1960_v53 = vsel %vm785_vm8, %v1955_v49, 0 }
 0x7be   :  { %v1831_v55 = vpop.f32.mrf.mxu2  ;;  %1969 = vmatpush.bf16.xpose.msrb.mxu2 %v1960_v53 }
 0x7bf   :  { %v1677_v57 = vpop.f32.mrf.mxu0  ;;  %v1882_v7 = vpack.c.bf16 %v1831_v55, %v1831_v55  ;;  %v1868_v55 = vpack.c.bf16 %v4252_v51, %v4252_v51 }
 0x7c0   :  { %v1871_v58 = vpack.c.bf16 %v1677_v57, %v1677_v57  ;;  %v1703_v59 = vpop.f32.mrf.mxu1 }
 0x7c1   :  { %v1873_v61 = vpack.c.bf16 %v1703_v59, %v1703_v59  ;;  %v2165_v45 = vunpack.c.l.b16 %v1882_v7 }
 0x7c2   :  { %v1894_v0 = vunpack.c.l.b16 %v1871_v58  ;;  %v1978_v58 = vunpack.c.l.b16 %v1868_v55 }
 0x7c3   :  { %v1924_v3 = vunpack.c.l.b16 %v1873_v61 }
 0x7c4   :  { %v1895_v5 = vpack.c.b16 %v1894_v0, %v1893_v63 }
 0x7c5   :  { %v1925_v9 = vpack.c.b16 %v1924_v3, %v1923_v2  ;;  %3250 = vmatmul.msk.bf16.vlgmr.msrb.gmra.mxu2 %vm785_vm8, %v1950_v1  ;;  %v1651_v10 = vpop.f32.mrf.mxu3 }
 0x7c6   :  { %v1833_v12 = vpop.f32.mrf.mxu2  ;;  %v1900_v13 = vsel %vm785_vm8, %v1895_v5, 0  ;;  %v1869_v53 = vpack.c.bf16 %v1651_v10, %v1651_v10 }
 0x7c7   :  { %v1883_v32 = vpack.c.bf16 %v1833_v12, %v1833_v12  ;;  %v1779_v16 = vpop.f32.mrf.mxu0  ;;  %1909 = vmatpush.bf16.xpose.msrb.mxu0 %v1900_v13  ;;  %v1930_v17 = vsel %vm785_vm8, %v1925_v9, 0 }
 0x7c8   :  { %v1805_v19 = vpop.f32.mrf.mxu1  ;;  %1939 = vmatpush.bf16.xpose.msra.mxu1 %v1930_v17  ;;  %v1878_v30 = vpack.c.bf16 %v1779_v16, %v1779_v16  ;;  %v1979_v57 = vunpack.c.l.b16 %v1869_v53 }
 0x7c9   :  { %v2166_v22 = vunpack.c.l.b16 %v1883_v32  ;;  %v1880_v29 = vpack.c.bf16 %v1805_v19, %v1805_v19 }
 0x7ca   :  { %v2109_v36 = vunpack.c.l.b16 %v1878_v30  ;;  %v1980_v59 = vpack.c.b16 %v1979_v57, %v1978_v58 }
 0x7cb   :  { %v2167_v25 = vpack.c.b16 %v2166_v22, %v2165_v45  ;;  %v2137_v39 = vunpack.c.l.b16 %v1880_v29 }
 0x7cd   :  { %2179 = vmatpush.bf16.msra.mxu2 %v2167_v25  ;;  %v1753_v20 = vpop.f32.mrf.mxu3 }
 0x7ce   :  { %3248 = vmatmul.msk.bf16.vlgmr.msrb.gmra.mxu0 %vm785_vm8, %v1890_v26  ;;  %v1876_v43 = vpack.c.bf16 %v1753_v20, %v1753_v20 }
 0x7cf   :  { %3249 = vmatmul.msk.bf16.vlgmr.msra.gmra.mxu1 %vm785_vm8, %v1920_v27  ;;  %v1781_v31 = vpop.f32.mrf.mxu0 }
 0x7d0   :  { %v1879_v33 = vpack.c.bf16 %v1781_v31, %v1781_v31  ;;  %v1807_v34 = vpop.f32.mrf.mxu1  ;;  %v1983_v49 = vunpack.c.l.b16 %v1876_v43 }
 0x7d1   :  { %v1881_v28 = vpack.c.bf16 %v1807_v34, %v1807_v34 }
 0x7d2   :  { %v2110_v37 = vunpack.c.l.b16 %v1879_v33 }
 0x7d3   :  { %v2138_v40 = vunpack.c.l.b16 %v1881_v28 }
 0x7d4   :  { %v2111_v44 = vpack.c.b16 %v2110_v37, %v2109_v36 }
 0x7d5   :  { %v2139_v42 = vpack.c.b16 %v2138_v40, %v2137_v39  ;;  %v1755_v46 = vpop.f32.mrf.mxu3 }
 0x7d6   :  { %v1877_v48 = vpack.c.bf16 %v1755_v46, %v1755_v46  ;;  %2123 = vmatpush.bf16.msra.mxu0 %v2111_v44 }
 0x7d7   :  { %2151 = vmatpush.bf16.msrb.mxu1 %v2139_v42 }
 0x7d8   :  { %v1984_v50 = vunpack.c.l.b16 %v1877_v48 }
 0x7da   :  { %v1985_v54 = vpack.c.b16 %v1984_v50, %v1983_v49 }
 0x7dc   :  { %v1990_v56 = vsel %vm785_vm8, %v1985_v54, 0 }
 0x7dd   :  { %v1857_v52 = vpop.f32.mrf.mxu3  ;;  %1999 = vmatpush.bf16.xpose.msrb.mxu3 %v1990_v56 }
 0x7de   :  { %v1884_v60 = vpack.c.bf16 %v1857_v52, %v1857_v52 }
 0x7e0   :  { %v2193_v0 = vunpack.c.l.b16 %v1884_v60 }
 0x7e4   :  { %3251 = vmatmul.msk.bf16.vlgmr.msrb.gmra.mxu3 %vm785_vm8, %v1980_v59 }
 0x7e5   :  { %v1859_v61 = vpop.f32.mrf.mxu3 }
 0x7e6   :  { %v1885_v63 = vpack.c.bf16 %v1859_v61, %v1859_v61 }
 0x7e8   :  { %v2194_v1 = vunpack.c.l.b16 %v1885_v63 }
 0x7ea   :  { %v2195_v2 = vpack.c.b16 %v2194_v1, %v2193_v0 }
 0x7ec   :  { %2207 = vmatpush.bf16.msra.mxu3 %v2195_v2 }
 0x848   :  { %v1971_v3 = vpop.f32.mrf.mxu2 }
 0x849   :  { %v1972_v4 = vadd.f32 %v1971_v3, %v3993_v41 }
 0x84b   :  { %v2018_v51 = vsel %vm896_vm10, %v1972_v4, -inf  ;;  %v1911_v10 = vpop.f32.mrf.mxu0 }
 0x84c   :  { %2019 = vmax.xlane.f32.xlu1 %v2018_v51  ;;  %v1941_v7 = vpop.f32.mrf.mxu1  ;;  %v1912_v11 = vadd.f32 %v1911_v10, %v3993_v41 }
 0x84d   :  { %v1942_v25 = vadd.f32 %v1941_v7, %v3993_v41 }
 0x84e   :  { %v2006_v12 = vsel %vm896_vm10, %v1912_v11, -inf }
 0x84f   :  { %v2012_v26 = vsel %vm896_vm10, %v1942_v25, -inf }
 0x850   :  { %v1973_v5 = vpop.f32.mrf.mxu2 }
 0x851   :  { %v1974_v6 = vadd.f32 %v1973_v5, %v3998_v47 }
 0x853   :  { %v2021_v9 = vsel %vm896_vm10, %v1974_v6, -inf  ;;  %v1913_v19 = vpop.f32.mrf.mxu0 }
 0x854   :  { %2022 = vmax.xlane.f32.xlu2 %v2021_v9  ;;  %v1943_v13 = vpop.f32.mrf.mxu1  ;;  %v1914_v21 = vadd.f32 %v1913_v19, %v3998_v47 }
 0x855   :  { %v1944_v15 = vadd.f32 %v1943_v13, %v3998_v47 }
 0x856   :  { %v2009_v24 = vsel %vm896_vm10, %v1914_v21, -inf }
 0x857   :  { %v2015_v32 = vsel %vm896_vm10, %v1944_v15, -inf }
 0x85c   :  { %2007 = vmax.xlane.f32.xlu2 %v2006_v12 }
 0x864   :  { %2016 = vmax.xlane.f32.xlu2 %v2015_v32 }
 0x867   :  { %v2001_v16 = vpop.f32.mrf.mxu3 }
 0x868   :  { %v2002_v17 = vadd.f32 %v2001_v16, %v3993_v41 }
 0x86a   :  { %v2024_v18 = vsel %vm896_vm10, %v2002_v17, -inf }
 0x86b   :  { %2025 = vmax.xlane.f32.xlu0 %v2024_v18 }
 0x86f   :  { %v2003_v45 = vpop.f32.mrf.mxu3 }
 0x870   :  { %v2004_v22 = vadd.f32 %v2003_v45, %v3998_v47 }
 0x872   :  { %v2027_v23 = vsel %vm896_vm10, %v2004_v22, -inf }
 0x873   :  { %2028 = vmax.xlane.f32.xlu1 %v2027_v23  ;;  %2010 = vmax.xlane.f32.xlu0 %v2009_v24 }
 0x87b   :  { %2013 = vmax.xlane.f32.xlu1 %v2012_v26 }
 0x8bf   :  { %v2020_v27 = vpop.xlane.xlu1 %2019 }
 0x8c0   :  { %v2034_v20 = vsub.f32 %v1972_v4, %v2020_v27 }
 0x8c2   :  { %v2046_v30 = vmul.f32 1.442695, %v2034_v20 }
 0x8c4   :  { %3595 = vpow2.f32 %v2046_v30 }
 0x8c7   :  { %v2023_v29 = vpop.xlane.xlu2 %2022 }
 0x8c8   :  { %v2035_v31 = vsub.f32 %v1974_v6, %v2023_v29 }
 0x8ca   :  { %v3596_v33 = vpop.eup %3595  ;;  %v2048_v34 = vmul.f32 1.442695, %v2035_v31 }
 0x8cb   :  { %v2066_v47 = vsel %vm896_vm10, %v3596_v33, 0.0 }
 0x8cc   :  { %3597 = vpow2.f32 %v2048_v34  ;;  %2067 = vadd.xlane.f32.xlu0 %v2066_v47 }
 0x8cf   :  { %v2008_v28 = vpop.xlane.xlu2 %2007 }
 0x8d0   :  { %v2030_v36 = vsub.f32 %v1912_v11, %v2008_v28 }
 0x8d2   :  { %v3598_v37 = vpop.eup %3597  ;;  %v2038_v39 = vmul.f32 1.442695, %v2030_v36 }
 0x8d3   :  { %v2069_v41 = vsel %vm896_vm10, %v3598_v37, 0.0 }
 0x8d4   :  { %3599 = vpow2.f32 %v2038_v39  ;;  %2070 = vadd.xlane.f32.xlu1 %v2069_v41 }
 0x8d7   :  { %v2017_v40 = vpop.xlane.xlu2 %2016 }
 0x8d8   :  { %v2033_v43 = vsub.f32 %v1944_v15, %v2017_v40 }
 0x8da   :  { %v4282_v44 = vpop.eup %3599  ;;  %v2044_v42 = vmul.f32 1.442695, %v2033_v43 }
 0x8db   :  { %v2054_v46 = vsel %vm896_vm10, %v4282_v44, 0.0 }
 0x8dc   :  { %3601 = vpow2.f32 %v2044_v42  ;;  %2055 = vadd.xlane.f32.xlu1 %v2054_v46 }
 0x8de   :  { %v2026_v48 = vpop.xlane.xlu0 %2025 }
 0x8df   :  { %v2036_v49 = vsub.f32 %v2002_v17, %v2026_v48 }
 0x8e1   :  { %v2050_v50 = vmul.f32 1.442695, %v2036_v49 }
 0x8e2   :  { %v4286_v53 = vpop.eup %3601 }
 0x8e3   :  { %3603 = vpow2.f32 %v2050_v50  ;;  %v2063_v54 = vsel %vm896_vm10, %v4286_v53, 0.0 }
 0x8e4   :  { %2064 = vadd.xlane.f32.xlu1 %v2063_v54 }
 0x8e6   :  { %v2029_v55 = vpop.xlane.xlu1 %2028  ;;  %v2011_v56 = vpop.xlane.xlu0 %2010 }
 0x8e7   :  { %v2037_v52 = vsub.f32 %v2004_v22, %v2029_v55  ;;  %v2031_v57 = vsub.f32 %v1914_v21, %v2011_v56 }
 0x8e9   :  { %v3604_v58 = vpop.eup %3603  ;;  %v2052_v59 = vmul.f32 1.442695, %v2037_v52  ;;  %v2040_v60 = vmul.f32 1.442695, %v2031_v57 }
 0x8ea   :  { %v2072_v61 = vsel %vm896_vm10, %v3604_v58, 0.0 }
 0x8eb   :  { %3605 = vpow2.f32 %v2052_v59  ;;  %2073 = vadd.xlane.f32.xlu2 %v2072_v61  ;;  %v3256_v59 = vld [vmem:[%s4491_s4 + $0x10] sm:$0xf] }
 0x8ec   :  { %3607 = vpow2.f32 %v2040_v60  ;;  %v2236_v60 = vsel %vm1125_vm12, %v3256_v59, 0 }
 0x8ed   :  { %2245 = vmatpush.bf16.msrb.mxu0 %v2236_v60 }
 0x8ee   :  { %v2014_v63 = vpop.xlane.xlu1 %2013 }
 0x8ef   :  { %v2032_v0 = vsub.f32 %v1942_v25, %v2014_v63 }
 0x8f1   :  { %v3606_v1 = vpop.eup %3605  ;;  %v2042_v2 = vmul.f32 1.442695, %v2032_v0 }
 0x8f2   :  { %v3608_v3 = vpop.eup %3607  ;;  %v2075_v4 = vsel %vm896_vm10, %v3606_v1, 0.0 }
 0x8f3   :  { %3609 = vpow2.f32 %v2042_v2  ;;  %2076 = vadd.xlane.f32.xlu0 %v2075_v4  ;;  %v2057_v51 = vsel %vm896_vm10, %v3608_v3, 0.0 }
 0x8f4   :  { %2058 = vadd.xlane.f32.xlu2 %v2057_v51  ;;  %v3257_v51 = vld [vmem:[%s4491_s4 + $0x14] sm:$0xf] }
 0x8f9   :  { %v3610_v5 = vpop.eup %3609 }
 0x8fa   :  { %v2060_v6 = vsel %vm896_vm10, %v3610_v5, 0.0 }
 0x8fb   :  { %2061 = vadd.xlane.f32.xlu0 %v2060_v6  ;;  %v2261_v6 = vsel %vm1125_vm12, %v3257_v51, 0 }
 0x8fc   :  { %2270 = vmatpush.bf16.msra.mxu1 %v2261_v6 }
 0x93f   :  { %v2068_v7 = vpop.xlane.xlu0 %2067 }
 0x940   :  { %3611 = vrcp.f32 %v2068_v7 }
 0x946   :  { %v3612_v10 = vpop.eup %3611 }
 0x947   :  { %v2071_v9 = vpop.xlane.xlu1 %2070  ;;  %v2090_v11 = vmul.f32 %v3612_v10, %v3596_v33 }
 0x948   :  { %3613 = vrcp.f32 %v2071_v9 }
 0x949   :  { %v2098_v13 = vpack.c.bf16 %v2090_v11, %v2090_v11 }
 0x94b   :  { %v2160_v16 = vunpack.c.l.b16 %v2098_v13 }
 0x94e   :  { %v3614_v12 = vpop.eup %3613 }
 0x94f   :  { %v2091_v15 = vmul.f32 %v3614_v12, %v3598_v37  ;;  %v2056_v19 = vpop.xlane.xlu1 %2055 }
 0x951   :  { %v2099_v32 = vpack.c.bf16 %v2091_v15, %v2091_v15 }
 0x953   :  { %v2161_v17 = vunpack.c.l.b16 %v2099_v32 }
 0x955   :  { %v2162_v18 = vpack.c.b16 %v2161_v17, %v2160_v16 }
 0x957   :  { %3254 = vmatmul.msk.bf16.vlgmr.msra.gmra.mxu2 %vm896_vm10, %v2162_v18  ;;  %v2065_v45 = vpop.xlane.xlu1 %2064 }
 0x95e   :  { %v2074_v21 = vpop.xlane.xlu2 %2073 }
 0x95f   :  { %3615 = vrcp.f32 %v2074_v21 }
 0x960   :  { %3617 = vrcp.f32 %v2056_v19 }
 0x965   :  { %v3616_v23 = vpop.eup %3615 }
 0x966   :  { %v2077_v22 = vpop.xlane.xlu0 %2076  ;;  %v3618_v25 = vpop.eup %3617  ;;  %v2092_v26 = vmul.f32 %v3616_v23, %v3604_v58 }
 0x967   :  { %v2059_v24 = vpop.xlane.xlu2 %2058  ;;  %3619 = vrcp.f32 %v2077_v22  ;;  %v2086_v27 = vmul.f32 %v3618_v25, %v4282_v44 }
 0x968   :  { %3621 = vrcp.f32 %v2059_v24  ;;  %v2100_v29 = vpack.c.bf16 %v2092_v26, %v2092_v26 }
 0x969   :  { %3623 = vrcp.f32 %v2065_v45  ;;  %v2094_v47 = vpack.c.bf16 %v2086_v27, %v2086_v27 }
 0x96a   :  { %v2188_v41 = vunpack.c.l.b16 %v2100_v29 }
 0x96b   :  { %v2104_v43 = vunpack.c.l.b16 %v2094_v47 }
 0x96d   :  { %v3620_v20 = vpop.eup %3619 }
 0x96e   :  { %v3622_v30 = vpop.eup %3621  ;;  %v2093_v31 = vmul.f32 %v3620_v20, %v3606_v1  ;;  %v2062_v33 = vpop.xlane.xlu0 %2061  ;;  %v3259_v1 = vld [vmem:[%s4491_s4 + $0x1c] sm:$0xf] }
 0x96f   :  { %v3624_v34 = vpop.eup %3623  ;;  %v2087_v28 = vmul.f32 %v3622_v30, %v3608_v3  ;;  %3625 = vrcp.f32 %v2062_v33  ;;  %v2311_v4 = vsel %vm1125_vm12, %v3259_v1, 0 }
 0x970   :  { %v2101_v36 = vpack.c.bf16 %v2093_v31, %v2093_v31  ;;  %v2089_v39 = vmul.f32 %v3624_v34, %v4286_v53  ;;  %v3258_v53 = vld [vmem:[%s4491_s4 + $0x18] sm:$0xf]  ;;  %2320 = vmatpush.bf16.msrb.mxu3 %v2311_v4 }
 0x971   :  { %v2095_v37 = vpack.c.bf16 %v2087_v28, %v2087_v28  ;;  %v2286_v57 = vsel %vm1125_vm12, %v3258_v53, 0 }
 0x972   :  { %v2189_v40 = vunpack.c.l.b16 %v2101_v36  ;;  %v2097_v49 = vpack.c.bf16 %v2089_v39, %v2089_v39  ;;  %2295 = vmatpush.bf16.msrb.mxu2 %v2286_v57  ;;  %v3539_v39 = vld [vmem:[%s4496_s9 + $0x9] ss:$0 sm:$0xff] }
 0x973   :  { %v2105_v42 = vunpack.c.l.b16 %v2095_v37 }
 0x974   :  { %v2190_v46 = vpack.c.b16 %v2189_v40, %v2188_v41  ;;  %v2133_v55 = vunpack.c.l.b16 %v2097_v49 }
 0x975   :  { %v3626_v48 = vpop.eup %3625  ;;  %v2106_v44 = vpack.c.b16 %v2105_v42, %v2104_v43 }
 0x976   :  { %v2088_v50 = vmul.f32 %v3626_v48, %v3610_v5  ;;  %3255 = vmatmul.msk.bf16.vlgmr.msra.gmra.mxu3 %vm896_vm10, %v2190_v46 }
 0x977   :  { %3252 = vmatmul.msk.bf16.vlgmr.msra.gmra.mxu0 %vm896_vm10, %v2106_v44 }
 0x978   :  { %v2096_v54 = vpack.c.bf16 %v2088_v50, %v2088_v50 }
 0x97a   :  { %v2132_v56 = vunpack.c.l.b16 %v2096_v54 }
 0x97c   :  { %v2134_v52 = vpack.c.b16 %v2133_v55, %v2132_v56 }
 0x97e   :  { %3253 = vmatmul.msk.bf16.vlgmr.msrb.gmra.mxu1 %vm896_vm10, %v2134_v52 }
 0x9da   :  { %v2181_v58 = vpop.f32.mrf.mxu2 }
 0x9db   :  { %v2218_v61 = vpack.c.bf16 %v2181_v58, %v2181_v58 }
 0x9dd   :  { %v2279_v2 = vunpack.c.l.b16 %v2218_v61 }
 0x9e2   :  { %v2183_v63 = vpop.f32.mrf.mxu2 }
 0x9e3   :  { %v2219_v0 = vpack.c.bf16 %v2183_v63, %v2183_v63 }
 0x9e5   :  { %v2280_v3 = vunpack.c.l.b16 %v2219_v0 }
 0x9e7   :  { %v2281_v5 = vpack.c.b16 %v2280_v3, %v2279_v2 }
 0x9e9   :  { %3262 = vmatmul.msk.bf16.vlgmr.msrb.gmra.mxu2 %vm785_vm8, %v2281_v5 }
 0x9f4   :  { %v2125_v7 = vpop.f32.mrf.mxu0 }
 0x9f5   :  { %v2214_v10 = vpack.c.bf16 %v2125_v7, %v2125_v7 }
 0x9f7   :  { %v2229_v15 = vunpack.c.l.b16 %v2214_v10 }
 0x9f9   :  { %v2209_v9 = vpop.f32.mrf.mxu3 }
 0x9fa   :  { %v2220_v16 = vpack.c.bf16 %v2209_v9, %v2209_v9 }
 0x9fb   :  { %v2153_v11 = vpop.f32.mrf.mxu1 }
 0x9fc   :  { %v2127_v12 = vpop.f32.mrf.mxu0  ;;  %v2216_v19 = vpack.c.bf16 %v2153_v11, %v2153_v11  ;;  %v2304_v22 = vunpack.c.l.b16 %v2220_v16 }
 0x9fd   :  { %v2215_v13 = vpack.c.bf16 %v2127_v12, %v2127_v12  ;;  %v3494_v12 = vld [vmem:[%s4492_s5 + $0x10] sm:$0xff] }
 0x9fe   :  { %v2254_v25 = vunpack.c.l.b16 %v2216_v19 }
 0x9ff   :  { %v2230_v32 = vunpack.c.l.b16 %v2215_v13 }
 0xa01   :  { %v2231_v17 = vpack.c.b16 %v2230_v32, %v2229_v15  ;;  %v2211_v18 = vpop.f32.mrf.mxu3 }
 0xa02   :  { %v2221_v21 = vpack.c.bf16 %v2211_v18, %v2211_v18 }
 0xa03   :  { %3260 = vmatmul.msk.bf16.vlgmr.msrb.gmra.mxu0 %vm785_vm8, %v2231_v17  ;;  %v2155_v45 = vpop.f32.mrf.mxu1 }
 0xa04   :  { %v2305_v23 = vunpack.c.l.b16 %v2221_v21  ;;  %v2217_v24 = vpack.c.bf16 %v2155_v45, %v2155_v45 }
 0xa06   :  { %v2306_v26 = vpack.c.b16 %v2305_v23, %v2304_v22  ;;  %v2255_v27 = vunpack.c.l.b16 %v2217_v24 }
 0xa08   :  { %v2256_v20 = vpack.c.b16 %v2255_v27, %v2254_v25  ;;  %3263 = vmatmul.msk.bf16.vlgmr.msrb.gmra.mxu3 %vm785_vm8, %v2306_v26 }
 0xa0a   :  { %3261 = vmatmul.msk.bf16.vlgmr.msra.gmra.mxu1 %vm785_vm8, %v2256_v20 }
 0xa6c   :  { %v2297_v29 = vpop.f32.mrf.mxu2 }
 0xa6d   :  { %v2330_v28 = vsel %vm317_vm0, %v2297_v29, 0.0 }
 0xa74   :  { %v2299_v42 = vpop.f32.mrf.mxu2 }
 0xa75   :  { %v2337_v55 = vsel %vm317_vm0, %v2299_v42, 0.0 }
 0xa80   :  { %v2247_v30 = vpop.f32.mrf.mxu0 }
 0xa81   :  { %v2327_v33 = vsel %vm317_vm0, %v2247_v30, 0.0 }
 0xa87   :  { %v2272_v31 = vpop.f32.mrf.mxu1 }
 0xa88   :  { %v2328_v34 = vsel %vm317_vm0, %v2272_v31, 0.0  ;;  %v2249_v40 = vpop.f32.mrf.mxu0  ;;  %v3540_v31 = vld [vmem:[%s4496_s9 + $0xa] ss:$0 sm:$0xff] }
 0xa89   :  { %v2329_v47 = vadd.f32 %v2328_v34, %v2327_v33  ;;  %v2334_v44 = vsel %vm317_vm0, %v2249_v40, 0.0 }
 0xa8b   :  { %v2322_v36 = vpop.f32.mrf.mxu3  ;;  %v2331_v37 = vadd.f32 %v2330_v28, %v2329_v47 }
 0xa8c   :  { %v2332_v41 = vsel %vm317_vm0, %v2322_v36, 0.0  ;;  %v3541_v36 = vld [vmem:[%s4496_s9 + $0xb] ss:$0 sm:$0xff] }
 0xa8d   :  { %v2333_v43 = vadd.f32 %v2332_v41, %v2331_v37 }
 0xa8f   :  { %v2343_v46 = vadd.f32 %v3539_v39, %v2333_v43  ;;  %v2274_v48 = vpop.f32.mrf.mxu1 }
 0xa90   :  { %v2335_v49 = vsel %vm317_vm0, %v2274_v48, 0.0  ;;  %v3502_v48 = vld [vmem:[%s4493_s6 + $0x70] sm:$0xff] }
 0xa91   :  { %v4330_v50 = vadd.f32 %v2343_v46, %v4131_v8  ;;  %v2336_v54 = vadd.f32 %v2335_v49, %v2334_v44  ;;  %v3503_v46 = vld [vmem:[%s4493_s6 + $0x78] sm:$0xff]  ;;  %v3501_v44 = vld [vmem:[%s4493_s6 + $0x68] sm:$0xff]  ;;  %v3500_v49 = vld [vmem:[%s4493_s6 + $0x60] sm:$0xff] }
 0xa92   :  { %2528 = vmatpush.bf16.msrb.mxu1 %v3503_v46  ;;  %v3511_v46 = vld [vmem:[%s4495_s8 + $0x18] sm:$0xff] }
 0xa93   :  { %v2324_v56 = vpop.f32.mrf.mxu3  ;;  %v2338_v52 = vadd.f32 %v2337_v55, %v2336_v54  ;;  %v2349_v53 = vsel %vm317_vm0, %v4330_v50, 0.0  ;;  %v2357_v57 = vmul.f32 %v4330_v50, %v4330_v50  ;;  %v3499_v54 = vld [vmem:[%s4493_s6 + $0x58] sm:$0xff]  ;;  %v3498_v55 = vld [vmem:[%s4493_s6 + $0x50] sm:$0xff] }
 0xa94   :  { %v2339_v58 = vsel %vm317_vm0, %v2324_v56, 0.0  ;;  %2350 = vadd.xlane.f32.xlu2 %v2349_v53  ;;  %v3497_v56 = vld [vmem:[%s4493_s6 + $0x48] sm:$0xff]  ;;  %v3496_v53 = vld [vmem:[%s4493_s6 + $0x40] sm:$0xff] }
 0xa95   :  { %v2340_v59 = vadd.f32 %v2339_v58, %v2338_v52  ;;  %v2359_v60 = vsel %vm317_vm0, %v2357_v57, 0.0  ;;  %v3542_v52 = vld [vmem:[%s4497_s10 + $0x1] ss:$0 sm:$0xff] }
 0xa96   :  { %2360 = vadd.xlane.f32.xlu1 %v2359_v60  ;;  %2529 = vmatpush.bf16.msrb.mxu1 %v3502_v48  ;;  %v3518_v48 = vld [vmem:[%s4495_s8 + $0x50] sm:$0xff] }
 0xa97   :  { %v2344_v8 = vadd.f32 %v3539_v39, %v2340_v59 }
 0xa99   :  { %v4340_v61 = vadd.f32 %v2344_v8, %v4139_v14  ;;  %v3495_v14 = vld [vmem:[%s4492_s5 + $0x18] sm:$0xff] }
 0xa9a   :  { %2434 = vmatpush.bf16.msra.mxu0 %v3495_v14  ;;  %2530 = vmatpush.bf16.msrb.mxu1 %v3501_v44  ;;  %v3517_v44 = vld [vmem:[%s4495_s8 + $0x48] sm:$0xff] }
 0xa9b   :  { %v2352_v63 = vsel %vm317_vm0, %v4340_v61, 0.0  ;;  %v2358_v0 = vmul.f32 %v4340_v61, %v4340_v61 }
 0xa9c   :  { %2353 = vadd.xlane.f32.xlu0 %v2352_v63 }
 0xa9d   :  { %v2362_v1 = vsel %vm317_vm0, %v2358_v0, 0.0 }
 0xa9e   :  { %2363 = vadd.xlane.f32.xlu2 %v2362_v1  ;;  %2435 = vmatpush.bf16.msra.mxu0 %v3494_v12 }
 0xa9f   :  { %2531 = vmatpush.bf16.msrb.mxu1 %v3500_v49 }
 0xaa3   :  { %2532 = vmatpush.bf16.msrb.mxu1 %v3499_v54 }
 0xaa7   :  { %2533 = vmatpush.bf16.msrb.mxu1 %v3498_v55 }
 0xaab   :  { %2534 = vmatpush.bf16.msrb.mxu1 %v3497_v56  ;;  %v3510_v56 = vld [vmem:[%s4495_s8 + $0x10] sm:$0xff] }
 0xaaf   :  { %2535 = vmatpush.bf16.msrb.mxu1 %v3496_v53  ;;  %v3509_v53 = vld [vmem:[%s4495_s8 + $0x8] sm:$0xff] }
 0xb07   :  { %v2351_v2 = vpop.xlane.xlu2 %2350 }
 0xb08   :  { %v2355_v3 = vmul.f32 %v2351_v2, %v3870_v62 }
 0xb09   :  { %v2361_v4 = vpop.xlane.xlu1 %2360 }
 0xb0a   :  { %v2367_v51 = vmul.f32 %v2355_v3, %v2355_v3  ;;  %v2365_v5 = vmul.f32 %v2361_v4, %v3870_v62 }
 0xb0c   :  { %v2369_v6 = vsub.f32 %v2365_v5, %v2367_v51 }
 0xb0e   :  { %v2371_v7 = vmax.f32 %v2369_v6, 0.0 }
 0xb0f   :  { %v2354_v9 = vpop.xlane.xlu0 %2353 }
 0xb10   :  { %v2375_v10 = vadd.f32 1e-12, %v2371_v7  ;;  %v2356_v11 = vmul.f32 %v2354_v9, %v3870_v62 }
 0xb11   :  { %v2364_v13 = vpop.xlane.xlu2 %2363 }
 0xb12   :  { %3627 = vrsqrt.f32 %v2375_v10  ;;  %v2368_v15 = vmul.f32 %v2356_v11, %v2356_v11  ;;  %v2366_v32 = vmul.f32 %v2364_v13, %v3870_v62  ;;  %vm2383_vm12 = vweird.f32 %v2375_v10 }
 0xb13   :  { %v2373_v62 = vsub.f32 %v4330_v50, %v2355_v3  ;;  %v2374_v47 = vsub.f32 %v4340_v61, %v2356_v11 }
 0xb14   :  { %v2370_v16 = vsub.f32 %v2366_v32, %v2368_v15 }
 0xb16   :  { %v2372_v17 = vmax.f32 %v2370_v16, 0.0  ;;  %v3337_v16 = vld [vmem:[%s4494_s7 + $0x10] sm:$0xf] }
 0xb18   :  { %v3628_v18 = vpop.eup %3627  ;;  %v2376_v21 = vadd.f32 1e-12, %v2372_v17  ;;  %v3507_v17 = vld [vmem:[%s4494_s7 + $0x14] sm:$0xf0] }
 0xb19   :  { %v2378_v19 = vmul.f32 %v3628_v18, %v2375_v10  ;;  %vm2384_vm8 = vweird.f32 %v3628_v18 }
 0xb1a   :  { %3629 = vrsqrt.f32 %v2376_v21  ;;  %vm2385_vm13 = vmor %vm2383_vm12, %vm2384_vm8  ;;  %vm2393_vm15 = vweird.f32 %v2376_v21 }
 0xb1b   :  { %v2379_v45 = vmul.f32 %v3628_v18, %v2378_v19  ;;  %v3338_v19 = vor.u32 %v3507_v17, %v3337_v16 }
 0xb1d   :  { %v2380_v22 = vmul.f32 0.5, %v2379_v45  ;;  %2605 = vmatpush.bf16.msra.mxu3 %v3338_v19 }
 0xb1f   :  { %v2381_v23 = vsub.f32 1.5, %v2380_v22 }
 0xb20   :  { %v3630_v24 = vpop.eup %3629 }
 0xb21   :  { %v2382_v25 = vmul.f32 %v3628_v18, %v2381_v23  ;;  %v2388_v26 = vmul.f32 %v3630_v24, %v2376_v21  ;;  %vm2394_vm14 = vweird.f32 %v3630_v24  ;;  %v3339_v21 = vld [vmem:[%s4494_s7 + $0x18] sm:$0xf0]  ;;  %v3543_v23 = vld [vmem:[%s4496_s9 + $0xc] ss:$0 sm:$0xff] }
 0xb22   :  { %vm2395_vm1 = vmor %vm2393_vm15, %vm2394_vm14 }
 0xb23   :  { %v2389_v27 = vmul.f32 %v3630_v24, %v2388_v26  ;;  %v2386_v20 = vsel %vm2385_vm13, %v3628_v18, %v2382_v25  ;;  %v3506_v18 = vld [vmem:[%s4494_s7 + $0x14] sm:$0xf] }
 0xb24   :  { %v2397_v33 = vmul.f32 %v2386_v20, %v2373_v62  ;;  %v3342_v45 = vor.u32 %v3506_v18, %v3339_v21 }
 0xb25   :  { %v2390_v30 = vmul.f32 0.5, %v2389_v27 }
 0xb26   :  { %v2400_v37 = vmul.f32 %v3540_v31, %v2397_v33  ;;  %2618 = vmatpush.bf16.msrb.mxu0 %v3342_v45  ;;  %v3329_v33 = vld [vmem:[%s4494_s7] sm:$0xf] }
 0xb27   :  { %v2391_v29 = vsub.f32 1.5, %v2390_v30  ;;  %v3689_v30 = vmov 0.0  }
 0xb28   :  { %v2403_v40 = vadd.f32 %v3541_v36, %v2400_v37  ;;  %v2545_v62 = vsel %vm2544_vm2, 0.125, %v3689_v30  ;;  %v3514_v37 = vld [vmem:[%s4495_s8 + $0x30] sm:$0xff] }
 0xb29   :  { %v2392_v34 = vmul.f32 %v3630_v24, %v2391_v29 }
 0xb2b   :  { %v2396_v28 = vsel %vm2395_vm1, %v3630_v24, %v2392_v34 }
 0xb2c   :  { %v2398_v39 = vmul.f32 %v2396_v28, %v2374_v47  ;;  %v3523_v47 = vld [vmem:[%s4495_s8 + $0x78] sm:$0xff] }
 0xb2d   :  { %v3515_v28 = vld [vmem:[%s4495_s8 + $0x38] sm:$0xff] }
 0xb2e   :  { %v2401_v41 = vmul.f32 %v3540_v31, %v2398_v39  ;;  %v2546_v31 = vpack.c.bf16 %v2545_v62, %v2545_v62  ;;  %v3521_v39 = vld [vmem:[%s4495_s8 + $0x68] sm:$0xff] }
 0xb30   :  { %v2404_v43 = vadd.f32 %v3541_v36, %v2401_v41  ;;  %v3522_v36 = vld [vmem:[%s4495_s8 + $0x70] sm:$0xff]  ;;  %v3513_v41 = vld [vmem:[%s4495_s8 + $0x28] sm:$0xff] }
 0xb32   :  { %v2405_v42 = vpack.c.bf16 %v2404_v43, %v2403_v40  ;;  %v3520_v40 = vld [vmem:[%s4495_s8 + $0x60] sm:$0xff] }
 0xb33   :  { %v3512_v43 = vld [vmem:[%s4495_s8 + $0x20] sm:$0xff] }
 0xb34   :  { %3276 = vmatmul.msk.bf16.vlgmr.msra.gmra.mxu0 %vm317_vm0, %v2405_v42  ;;  %v3519_v42 = vld [vmem:[%s4495_s8 + $0x58] sm:$0xff] }
 0xbb1   :  { %v2437_v57 = vpop.f32.mrf.mxu0 }
 0xbb2   :  { %v2438_v58 = vadd.f32 %v3542_v52, %v2437_v57  ;;  %v3508_v57 = vld [vmem:[%s4495_s8] sm:$0xff] }
 0xbb4   :  { %v2442_v59 = vmul.f32 %v2438_v58, %v2438_v58 }
 0xbb6   :  { %v2444_v60 = vmul.f32 %v2442_v59, %v2438_v58 }
 0xbb8   :  { %v2446_v8 = vmul.f32 0.044715, %v2444_v60 }
 0xbb9   :  { %v2439_v63 = vpop.f32.mrf.mxu0 }
 0xbba   :  { %v2448_v0 = vadd.f32 %v2446_v8, %v2438_v58  ;;  %v2440_v1 = vadd.f32 %v3542_v52, %v2439_v63  ;;  %v3516_v52 = vld [vmem:[%s4495_s8 + $0x40] sm:$0xff]  ;;  %s3690_s8 = smov [#allocation2]  }
 0xbbb   :  { %s2796_s16 = sshll.u32 %s3690_s8, 4  ;;  %s2797_s16 = int_to_ptr.vmem [resolvable:$true] %s2796_s16 }
 0xbbc   :  { %v2450_v2 = vmul.f32 0.7978846, %v2448_v0  ;;  %v2443_v3 = vmul.f32 %v2440_v1, %v2440_v1 }
 0xbbe   :  { %v2445_v4 = vmul.f32 %v2443_v3, %v2440_v1  ;;  %3631 = vtanh.f32 %v2450_v2 }
 0xbc0   :  { %v2447_v51 = vmul.f32 0.044715, %v2445_v4 }
 0xbc2   :  { %v2449_v5 = vadd.f32 %v2447_v51, %v2440_v1 }
 0xbc4   :  { %v2451_v6 = vmul.f32 0.7978846, %v2449_v5  ;;  %v3632_v14 = vpop.eup %3631 }
 0xbc5   :  { %v2454_v7 = vadd.f32 1.0, %v3632_v14 }
 0xbc6   :  { %3633 = vtanh.f32 %v2451_v6 }
 0xbc7   :  { %v2456_v10 = vmul.f32 0.5, %v2454_v7  ;;  %v3544_v7 = vld [vmem:[%s4497_s10 + $0x2] ss:$0 sm:$0xff] }
 0xbc9   :  { %v2458_v13 = vmul.f32 %v2456_v10, %v2438_v58  ;;  %v3326_v58 = vld [vmem:[%s4497_s10 + $0x3] ss:$4 sm:$0x3] }
 0xbca   :  { %v2573_v59 = vperm.slane %v3326_v58, 1  ;;  %v2572_v0 = vperm.slane %v3326_v58, 0 }
 0xbcc   :  { %v3634_v9 = vpop.eup %3633 }
 0xbcd   :  { %v2455_v11 = vadd.f32 1.0, %v3634_v9 }
 0xbcf   :  { %v2457_v12 = vmul.f32 0.5, %v2455_v11 }
 0xbd1   :  { %v2459_v15 = vmul.f32 %v2457_v12, %v2440_v1 }
 0xbd3   :  { %v2460_v32 = vpack.c.bf16 %v2459_v15, %v2458_v13 }
 0xbd5   :  { %2536 = vmatmul.bf16.vlgmr.msrb.gmra.mxu1 %v2460_v32 }
 0xc52   :  { %v2537_v22 = vpop.f32.mrf.mxu1 }
 0xc53   :  { %v2538_v24 = vadd.f32 %v3543_v23, %v2537_v22 }
 0xc55   :  { %v2542_v27 = vadd.f32 %v2538_v24, %v4330_v50  ;;  %v3330_v50 = vor.u32 %v3505_v35, %v3329_v33 }
 0xc57   :  { %2606 = vmatpush.bf16.msra.mxu3 %v3330_v50 }
 0xc5a   :  { %v2539_v25 = vpop.f32.mrf.mxu1 }
 0xc5b   :  { %v2540_v26 = vadd.f32 %v3543_v23, %v2539_v25  ;;  %2777 = vmatpush.bf16.msrb.mxu3 %v3523_v47 }
 0xc5d   :  { %v2543_v20 = vadd.f32 %v2540_v26, %v4340_v61  ;;  %v3331_v61 = vld [vmem:[%s4494_s7 + $0x8] sm:$0xf0] }
 0xc5e   :  { %v3334_v34 = vor.u32 %v3504_v38, %v3331_v61 }
 0xc5f   :  { %v2547_v29 = vpack.c.bf16 %v2543_v20, %v2542_v27  ;;  %2778 = vmatpush.bf16.msrb.mxu3 %v3522_v36 }
 0xc60   :  { %2619 = vmatpush.bf16.msrb.mxu0 %v3334_v34 }
 0xc61   :  { %2558 = vmatpush.bf16.msra.mxu2 %v2547_v29 }
 0xc63   :  { %2779 = vmatpush.bf16.msrb.mxu3 %v3521_v39 }
 0xc64   :  { %3325 = vmatmul.msk.bf16.vlgmr.msra.gmra.mxu2 %vm896_vm10, %v2546_v31 }
 0xc65   :  { %2764 = vmatpush.bf16.msrb.mxu2 %v3515_v28 }
 0xc67   :  { %2780 = vmatpush.bf16.msrb.mxu3 %v3520_v40 }
 0xc69   :  { %2765 = vmatpush.bf16.msrb.mxu2 %v3514_v37 }
 0xc6b   :  { %2781 = vmatpush.bf16.msrb.mxu3 %v3519_v42 }
 0xc6d   :  { %2766 = vmatpush.bf16.msrb.mxu2 %v3513_v41 }
 0xc6f   :  { %2782 = vmatpush.bf16.msrb.mxu3 %v3518_v48 }
 0xc71   :  { %2767 = vmatpush.bf16.msrb.mxu2 %v3512_v43 }
 0xc73   :  { %2783 = vmatpush.bf16.msrb.mxu3 %v3517_v44 }
 0xc75   :  { %2768 = vmatpush.bf16.msrb.mxu2 %v3511_v46 }
 0xc77   :  { %2784 = vmatpush.bf16.msrb.mxu3 %v3516_v52 }
 0xc79   :  { %2769 = vmatpush.bf16.msrb.mxu2 %v3510_v56 }
 0xc7d   :  { %2770 = vmatpush.bf16.msrb.mxu2 %v3509_v53 }
 0xc81   :  { %2771 = vmatpush.bf16.msrb.mxu2 %v3508_v57 }
 0xce7   :  { %v2560_v49 = vpop.f32.mrf.mxu2 }
 0xce8   :  { %v2564_v54 = vpack.c.bf16 %v2560_v49, %v2560_v49 }
 0xcea   :  { %3343 = vmatmul.msk.bf16.vlgmr.msra.gmra.mxu3 %vm317_vm0, %v2564_v54  ;;  %3344 = vmatmul.msk.bf16.vlgmr.msrb.gmra.mxu0 %vm317_vm0, %v2564_v54  ;;  %vm2628_vm0 = vcmask 1041408  }
 0xcef   :  { %v2562_v55 = vpop.f32.mrf.mxu2 }
 0xd67   :  { %v2621_v60 = vpop.f32.mrf.mxu0 }
 0xd68   :  { %v2622_v8 = vadd.f32 %v2621_v60, %v2573_v59 }
 0xd6a   :  { %v2633_v63 = vpack.c.bf16 %v2622_v8, %v2622_v8  ;;  %v2627_v2 = vrot.slane %v2622_v8, 6 }
 0xd6c   :  { %2785 = vmatmul.bf16.vlgmr.msrb.gmra.mxu3 %v2633_v63 }
 0xd6d   :  { %v2608_v1 = vpop.f32.mrf.mxu3 }
 0xd6e   :  { %v2609_v3 = vadd.f32 %v2608_v1, %v2572_v0 }
 0xd6f   :  { %v2623_v4 = vpop.f32.mrf.mxu0 }
 0xd70   :  { %v2632_v51 = vpack.c.bf16 %v2609_v3, %v2609_v3  ;;  %v2629_v5 = vsel %vm2628_vm0, %v2609_v3, %v2627_v2 }
 0xd71   :  { %2631 = vst [vmem:[#allocation2] sm:$0xf] %v2629_v5 }
 0xd72   :  { %2772 = vmatmul.bf16.vlgmr.msrb.gmra.mxu2 %v2632_v51  ;;  %2801 = dma.vmem_to_hbm [thread:$0]  %s2797_s16, 64, %s2799_s17, [#allocation3]  }
 0xd75   :  { %v2610_v6 = vpop.f32.mrf.mxu3 }
 0xdef   :  { %v2786_v14 = vpop.f32.mrf.mxu3 }
 0xdf5   :  { %v2773_v9 = vpop.f32.mrf.mxu2 }
 0xdf6   :  { %v2774_v10 = vadd.f32 %v3544_v7, %v2773_v9 }
 0xdf7   :  { %v2788_v11 = vpop.f32.mrf.mxu3 }
 0xdf8   :  { %v2787_v12 = vadd.f32 %v2786_v14, %v2774_v10 }
 0xdfa   :  { %2790 = vst [vmem:[#allocation4] sm:$0x3] %v2787_v12 }
 0xdfb   :  { %2812 = dma.vmem_to_hbm [thread:$0]  %s2808_s20, 32, %s2810_s23, [#allocation5]  }
 0xdfd   :  { %v2775_v13 = vpop.f32.mrf.mxu2 }
 0xdfe   :  { %3683 = dma.done.wait [#allocation3], 64  }
 0xdff   :  { %3684 = vsyncadd [#allocation3], 4294967232 }
 0xe00   :  { %3685 = dma.done.wait [#allocation5], 32  }
 0xe01   :  { %3686 = vsyncadd [#allocation5], 4294967264 }
 0xe02   :  { %2821 = vsyncpa [#allocation3], 1 }
 0xe03   :  { %2822 = vsyncpa [#allocation5], 1 }

</bundles_post_ra>
